<compile_context>
chip_gen: v7x
topology: tpu7x:2x2x1
jax: 0.10.0
libtpu: 0.0.40
codegen_flags: <defaults>
</compile_context>

<pallas_src>
import functools

import jax
import jax.numpy as jnp
from jax.experimental import pallas as pl
from jax.experimental.pallas import tpu as pltpu


def _elu(v):
    return jnp.where(v > 0, v, jnp.exp(jnp.minimum(v, 0.0)) - 1.0)


def _sigmoid(v):
    # exact identity sigmoid(v) = 0.5*(tanh(v/2)+1): one EUP op on the GRU chain.
    return 0.5 * (jnp.tanh(0.5 * v) + 1.0)


def _vae_kernel(T, B, I, C, R, L, O, H, use_softmax, boff,
                xwin_ref, eps_ref,
                we_ref, wh2z_ref, wmulv_ref, wz2h_ref,
                wd_ref, wxgaux_ref, whg_ref, wout_ref, bias_ref,
                dec_ref, mulv_ref, aux_ref,
                hs_ref):
    f32 = jnp.float32

    def bseg(i, n):  # static, lane-tile-aligned slices of the packed bias vector
        return bias_ref[:, boff[i]:boff[i] + n]

    be, bh2z, bmulv = bseg(0, C), bseg(1, H), bseg(2, 2 * L)
    bz2h, bd = bseg(3, C), bseg(4, C)
    bxgaux, bhg, bout = bseg(5, 3 * R + O), bseg(6, 3 * R), bseg(7, O)

    # ----- CNN encoder: single fused (T*B, 3I) @ (3I, C) matmul -----------------
    act = _elu(jnp.dot(xwin_ref[...], we_ref[...],
                       preferred_element_type=f32) + be)          # (T*B, C)
    # mean-pool over time: T-1 VPU adds (free filler), no pool matrix / extra dot.
    enc = act[0:B, :]
    for t in range(1, T):
        enc = enc + act[t * B:(t + 1) * B, :]
    enc = enc * (1.0 / T)                                          # (B, C)

    # ----- h2z (Linear + ELU), then linear mu/logvar heads fused to (H, 2L) -----
    h = _elu(jnp.dot(enc, wh2z_ref[...], preferred_element_type=f32) + bh2z)
    mulv = jnp.dot(h, wmulv_ref[...], preferred_element_type=f32) + bmulv
    mulv_ref[...] = mulv                                           # (B, 2L), one store
    mu, logvar = mulv[:, :L], mulv[:, L:]

    # ----- reparameterized sample / z2h ----------------------------------------
    z = mu + eps_ref[...] * jnp.exp(0.5 * logvar)                  # (B, L)
    dec0 = _elu(jnp.dot(z, wz2h_ref[...], preferred_element_type=f32) + bz2h)  # (B, C)

    # ----- decoder "deconv": ONE (B, C)@(C, 3C) dot; 3 distinct time values -----
    y = jnp.dot(dec0, wd_ref[...], preferred_element_type=f32)     # (B, 3C)
    y0, y1, y2 = y[:, :C], y[:, C:2 * C], y[:, 2 * C:]
    dc_first = _elu(bd + y1 + y2)       # t == 0      (left zero-pad)
    dc_mid = _elu(bd + y0 + y1 + y2)    # 0 < t < T-1
    dc_last = _elu(bd + y0 + y1)        # t == T-1    (right zero-pad)

    # ----- fused GRU input gates + aux head: 3 dots (N = 3R+O <= 128 lanes) -----
    wxgaux = wxgaux_ref[...]
    ag_first = jnp.dot(dc_first, wxgaux, preferred_element_type=f32) + bxgaux
    ag_mid = jnp.dot(dc_mid, wxgaux, preferred_element_type=f32) + bxgaux
    ag_last = jnp.dot(dc_last, wxgaux, preferred_element_type=f32) + bxgaux
    gx_first, aux_first = ag_first[:, :3 * R], ag_first[:, 3 * R:]
    gx_mid, aux_mid = ag_mid[:, :3 * R], ag_mid[:, 3 * R:]
    gx_last, aux_last = ag_last[:, :3 * R], ag_last[:, 3 * R:]

    # aux output: only 3 distinct values -> build the slab, ONE dense store.
    aux_ref[...] = jnp.concatenate(
        [aux_first] + [aux_mid] * (T - 2) + [aux_last], axis=0)    # (T*B, O)

    # ----- GRU recurrence: fully unrolled, serial chain = h @ Whg + gates only ---
    whg = whg_ref[...]                                             # (R, 3R) fused
    h_t = jnp.zeros((B, R), f32)
    for t in range(T):                                             # T static: unrolled
        gx = gx_first if t == 0 else (gx_last if t == T - 1 else gx_mid)
        gh = jnp.dot(h_t, whg, preferred_element_type=f32) + bhg   # (B, 3R)
        r = _sigmoid(gx[:, :R] + gh[:, :R])
        zg = _sigmoid(gx[:, R:2 * R] + gh[:, R:2 * R])
        n = jnp.tanh(gx[:, 2 * R:] + r * gh[:, 2 * R:])
        h_t = (1.0 - zg) * n + zg * h_t
        hs_ref[pl.ds(t * B, B), :] = h_t

    # ----- output head: ONE (T*B, R) @ (R, O) dot + ONE dense store --------------
    out = jnp.dot(hs_ref[...], wout_ref[...], preferred_element_type=f32) + bout
    if use_softmax:
        m = jnp.max(out, axis=-1, keepdims=True)
        e = jnp.exp(out - m)
        out = e / jnp.sum(e, axis=-1, keepdims=True)
    dec_ref[...] = out


def _pack_biases(segments, align=128):
    """Pack (1, n) bias rows into one lane-tile-aligned row; return (pack, offsets)."""
    parts, offsets, off = [], [], 0
    for seg in segments:
        seg = seg.reshape(1, -1)
        n = seg.shape[-1]
        w = -(-n // align) * align
        parts.append(jnp.pad(seg, ((0, 0), (0, w - n))))
        offsets.append(off)
        off += w
    return jnp.concatenate(parts, axis=1), tuple(offsets)


def advanced_hybrid_vae_forward(x, eps, params, use_softmax=False):
    """x: (T, B, I) f32, eps: (B, L) f32. Returns (dec, (mu, logvar), aux_x)."""
    T, B, I = x.shape
    C = params["We"].shape[-1]
    H = params["Wh2z"].shape[-1]
    L = params["Wmu"].shape[-1]
    R = params["Whg"].shape[-1]
    O = params["Wout"].shape[-1]
    assert T >= 3, "first/mid/last gate hoisting + deconv decomposition need T >= 3"

    # Encoder conv windows concatenated along features -> one (T*B,3I)@(3I,C) dot.
    xpad = jnp.pad(x, ((1, 1), (0, 0), (0, 0)))                   # zero pad in time
    xwin = jnp.concatenate(
        [xpad[k:k + T].reshape(T * B, I) for k in range(3)], axis=1)   # (T*B, 3I)
    we_flat = params["We"].reshape(3 * I, C)                            # (3I, C)

    # Host-side fused parameter packing (free layout plumbing).
    wmulv = jnp.concatenate([params["Wmu"], params["Wlv"]], axis=1)     # (H, 2L)
    wd = jnp.concatenate([params["Wd"][k] for k in range(3)], axis=1)   # (C, 3C)
    wxgaux = jnp.concatenate([params["Wxg"][g] for g in range(3)]
                             + [params["Waux"]], axis=1)                # (C, 3R+O)
    whg = jnp.concatenate([params["Whg"][g] for g in range(3)], axis=1)  # (R, 3R)

    bmulv = jnp.concatenate([params["bmu"], params["blv"]], axis=1)
    bxgaux = jnp.concatenate([params["bxg"][g] for g in range(3)]
                             + [params["baux"]], axis=1)
    bhg = jnp.concatenate([params["bhg"][g] for g in range(3)], axis=1)
    bias_pack, boff = _pack_biases([params["be"], params["bh2z"], bmulv,
                                    params["bz2h"], params["bd"], bxgaux,
                                    bhg, params["bout"]])

    args = (xwin, eps, we_flat, params["Wh2z"], wmulv, params["Wz2h"],
            wd, wxgaux, whg, params["Wout"], bias_pack)

    vmem = pl.BlockSpec(memory_space=pltpu.MemorySpace.VMEM)
    kernel = functools.partial(_vae_kernel, T, B, I, C, R, L, O, H,
                               use_softmax, boff)

    dec, mulv, aux = pl.pallas_call(
        kernel,
        out_shape=(
            jax.ShapeDtypeStruct((T * B, O), jnp.float32),        # dec (flat in time)
            jax.ShapeDtypeStruct((B, 2 * L), jnp.float32),        # [mu | logvar]
            jax.ShapeDtypeStruct((T * B, O), jnp.float32),        # aux_x (flat in time)
        ),
        in_specs=[vmem] * len(args),
        out_specs=(vmem, vmem, vmem),
        scratch_shapes=[pltpu.VMEM((T * B, R), jnp.float32)],     # GRU hidden states
        compiler_params=pltpu.CompilerParams(
            vmem_limit_bytes=32 * 1024 * 1024),
    )(*args)

    mu, logvar = mulv[:, :L], mulv[:, L:]
    return dec.reshape(T, B, O), (mu, logvar), aux.reshape(T, B, O)


def init_params(key, I, C, R, L, O):
    H = 2 * L
    keys = jax.random.split(key, 20)
    s = 0.1

    def nrm(k, shape):
        return (s * jax.random.normal(k, shape)).astype(jnp.float32)

    return {
        "We":   nrm(keys[0], (3, I, C)),   "be":   nrm(keys[1], (1, C)),
        "Wh2z": nrm(keys[2], (C, H)),      "bh2z": nrm(keys[3], (1, H)),
        "Wmu":  nrm(keys[4], (H, L)),      "bmu":  nrm(keys[5], (1, L)),
        "Wlv":  nrm(keys[6], (H, L)),      "blv":  nrm(keys[7], (1, L)),
        "Wz2h": nrm(keys[8], (L, C)),      "bz2h": nrm(keys[9], (1, C)),
        "Wd":   nrm(keys[10], (3, C, C)),  "bd":   nrm(keys[11], (1, C)),
        "Waux": nrm(keys[12], (C, O)),     "baux": nrm(keys[13], (1, O)),
        "Wxg":  nrm(keys[14], (3, C, R)),  "Whg":  nrm(keys[15], (3, R, R)),
        "bxg":  nrm(keys[16], (3, 1, R)),  "bhg":  nrm(keys[17], (3, 1, R)),
        "Wout": nrm(keys[18], (R, O)),     "bout": nrm(keys[19], (1, O)),
    }


if __name__ == "__main__":
    key = jax.random.PRNGKey(0)
    kx, keps, kp = jax.random.split(key, 3)

    # small shapes: num_steps=8, batch=2, input_size=4, conv=32, rnn=32, latent=16, out=4
    T, B, I = 8, 2, 4
    C, R, L, O = 32, 32, 16, 4

    x = jax.random.normal(kx, (T, B, I), dtype=jnp.float32)
    eps = jax.random.normal(keps, (B, L), dtype=jnp.float32)
    params = init_params(kp, I, C, R, L, O)

    dec, qz, aux_x = advanced_hybrid_vae_forward(x, eps, params, use_softmax=False)
    (dec, qz, aux_x) = jax.block_until_ready((dec, qz, aux_x))

    assert dec.shape == (T, B, O)
    assert aux_x.shape == (T, B, O)
    assert qz[0].shape == (B, L) and qz[1].shape == (B, L)
    assert bool(jnp.all(jnp.isfinite(dec))) and bool(jnp.all(jnp.isfinite(aux_x)))
    assert bool(jnp.all(jnp.isfinite(qz[0]))) and bool(jnp.all(jnp.isfinite(qz[1])))
    print("KERNEL_OK")
</pallas_src>

<mosaic_0001>
module attributes {stable_mosaic.version = 11 : i64} {
  func.func @_vae_kernel(%arg0: memref<16x12xf32, #tpu.memory_space<vmem>>, %arg1: memref<2x16xf32, #tpu.memory_space<vmem>>, %arg2: memref<12x32xf32, #tpu.memory_space<vmem>>, %arg3: memref<32x32xf32, #tpu.memory_space<vmem>>, %arg4: memref<32x32xf32, #tpu.memory_space<vmem>>, %arg5: memref<16x32xf32, #tpu.memory_space<vmem>>, %arg6: memref<32x96xf32, #tpu.memory_space<vmem>>, %arg7: memref<32x100xf32, #tpu.memory_space<vmem>>, %arg8: memref<32x96xf32, #tpu.memory_space<vmem>>, %arg9: memref<32x4xf32, #tpu.memory_space<vmem>>, %arg10: memref<1x1024xf32, #tpu.memory_space<vmem>>, %arg11: memref<16x4xf32, #tpu.memory_space<vmem>>, %arg12: memref<2x32xf32, #tpu.memory_space<vmem>>, %arg13: memref<16x4xf32, #tpu.memory_space<vmem>>, %arg14: memref<16x32xf32, #tpu.memory_space<vmem>>) attributes {dimension_semantics = [], scalar_prefetch = 0 : i64, scratch_operands = 1 : i64, tpu.core_type = #tpu.core_type<tc>} {
    %c0 = arith.constant 0 : index
    %c0_0 = arith.constant 0 : index
    %0 = vector.load %arg10[%c0, %c0_0] : memref<1x1024xf32, #tpu.memory_space<vmem>>, vector<1x32xf32>
    %c0_1 = arith.constant 0 : index
    %c128 = arith.constant 128 : index
    %1 = vector.load %arg10[%c0_1, %c128] : memref<1x1024xf32, #tpu.memory_space<vmem>>, vector<1x32xf32>
    %c0_2 = arith.constant 0 : index
    %c256 = arith.constant 256 : index
    %2 = vector.load %arg10[%c0_2, %c256] : memref<1x1024xf32, #tpu.memory_space<vmem>>, vector<1x32xf32>
    %c0_3 = arith.constant 0 : index
    %c384 = arith.constant 384 : index
    %3 = vector.load %arg10[%c0_3, %c384] : memref<1x1024xf32, #tpu.memory_space<vmem>>, vector<1x32xf32>
    %c0_4 = arith.constant 0 : index
    %c512 = arith.constant 512 : index
    %4 = vector.load %arg10[%c0_4, %c512] : memref<1x1024xf32, #tpu.memory_space<vmem>>, vector<1x32xf32>
    %c0_5 = arith.constant 0 : index
    %c640 = arith.constant 640 : index
    %5 = vector.load %arg10[%c0_5, %c640] : memref<1x1024xf32, #tpu.memory_space<vmem>>, vector<1x100xf32>
    %c0_6 = arith.constant 0 : index
    %c768 = arith.constant 768 : index
    %6 = vector.load %arg10[%c0_6, %c768] : memref<1x1024xf32, #tpu.memory_space<vmem>>, vector<1x96xf32>
    %c0_7 = arith.constant 0 : index
    %c896 = arith.constant 896 : index
    %7 = vector.load %arg10[%c0_7, %c896] : memref<1x1024xf32, #tpu.memory_space<vmem>>, vector<1x4xf32>
    %c0_8 = arith.constant 0 : index
    %c0_9 = arith.constant 0 : index
    %8 = vector.load %arg0[%c0_8, %c0_9] : memref<16x12xf32, #tpu.memory_space<vmem>>, vector<16x12xf32>
    %c0_10 = arith.constant 0 : index
    %c0_11 = arith.constant 0 : index
    %9 = vector.load %arg2[%c0_10, %c0_11] : memref<12x32xf32, #tpu.memory_space<vmem>>, vector<12x32xf32>
    %cst = arith.constant dense<0.000000e+00> : vector<16x32xf32>
    %10 = tpu.matmul %8, %9, %cst {dimension_numbers = #tpu.dot_dimension_numbers<[1], [0], [0], [1], [0, 0, 1, 1], [], []>} : vector<16x12xf32>, vector<12x32xf32>, vector<16x32xf32> -> vector<16x32xf32>
    %11 = vector.broadcast %0 : vector<1x32xf32> to vector<16x32xf32>
    %12 = arith.addf %10, %11 : vector<16x32xf32>
    %cst_12 = arith.constant 0.000000e+00 : f32
    %13 = vector.broadcast %cst_12 : f32 to vector<16x32xf32>
    %14 = arith.cmpf ogt, %12, %13 : vector<16x32xf32>
    %cst_13 = arith.constant 0.000000e+00 : f32
    %15 = vector.broadcast %cst_13 : f32 to vector<16x32xf32>
    %16 = arith.minimumf %12, %15 : vector<16x32xf32>
    %17 = math.exp %16 : vector<16x32xf32>
    %cst_14 = arith.constant 1.000000e+00 : f32
    %18 = vector.broadcast %cst_14 : f32 to vector<16x32xf32>
    %19 = arith.subf %17, %18 : vector<16x32xf32>
    %20 = arith.select %14, %12, %19 : vector<16x32xi1>, vector<16x32xf32>
    %21 = vector.extract_strided_slice %20 {offsets = [0, 0], sizes = [2, 32], strides = [1, 1]} : vector<16x32xf32> to vector<2x32xf32>
    %22 = vector.extract_strided_slice %20 {offsets = [2, 0], sizes = [2, 32], strides = [1, 1]} : vector<16x32xf32> to vector<2x32xf32>
    %23 = arith.addf %21, %22 : vector<2x32xf32>
    %24 = vector.extract_strided_slice %20 {offsets = [4, 0], sizes = [2, 32], strides = [1, 1]} : vector<16x32xf32> to vector<2x32xf32>
    %25 = arith.addf %23, %24 : vector<2x32xf32>
    %26 = vector.extract_strided_slice %20 {offsets = [6, 0], sizes = [2, 32], strides = [1, 1]} : vector<16x32xf32> to vector<2x32xf32>
    %27 = arith.addf %25, %26 : vector<2x32xf32>
    %28 = vector.extract_strided_slice %20 {offsets = [8, 0], sizes = [2, 32], strides = [1, 1]} : vector<16x32xf32> to vector<2x32xf32>
    %29 = arith.addf %27, %28 : vector<2x32xf32>
    %30 = vector.extract_strided_slice %20 {offsets = [10, 0], sizes = [2, 32], strides = [1, 1]} : vector<16x32xf32> to vector<2x32xf32>
    %31 = arith.addf %29, %30 : vector<2x32xf32>
    %32 = vector.extract_strided_slice %20 {offsets = [12, 0], sizes = [2, 32], strides = [1, 1]} : vector<16x32xf32> to vector<2x32xf32>
    %33 = arith.addf %31, %32 : vector<2x32xf32>
    %34 = vector.extract_strided_slice %20 {offsets = [14, 0], sizes = [2, 32], strides = [1, 1]} : vector<16x32xf32> to vector<2x32xf32>
    %35 = arith.addf %33, %34 : vector<2x32xf32>
    %cst_15 = arith.constant 1.250000e-01 : f32
    %36 = vector.broadcast %cst_15 : f32 to vector<2x32xf32>
    %37 = arith.mulf %35, %36 : vector<2x32xf32>
    %c0_16 = arith.constant 0 : index
    %c0_17 = arith.constant 0 : index
    %38 = vector.load %arg3[%c0_16, %c0_17] : memref<32x32xf32, #tpu.memory_space<vmem>>, vector<32x32xf32>
    %cst_18 = arith.constant dense<0.000000e+00> : vector<2x32xf32>
    %39 = tpu.matmul %37, %38, %cst_18 {dimension_numbers = #tpu.dot_dimension_numbers<[1], [0], [0], [1], [0, 0, 1, 1], [], []>} : vector<2x32xf32>, vector<32x32xf32>, vector<2x32xf32> -> vector<2x32xf32>
    %40 = vector.broadcast %1 : vector<1x32xf32> to vector<2x32xf32>
    %41 = arith.addf %39, %40 : vector<2x32xf32>
    %cst_19 = arith.constant 0.000000e+00 : f32
    %42 = vector.broadcast %cst_19 : f32 to vector<2x32xf32>
    %43 = arith.cmpf ogt, %41, %42 : vector<2x32xf32>
    %cst_20 = arith.constant 0.000000e+00 : f32
    %44 = vector.broadcast %cst_20 : f32 to vector<2x32xf32>
    %45 = arith.minimumf %41, %44 : vector<2x32xf32>
    %46 = math.exp %45 : vector<2x32xf32>
    %cst_21 = arith.constant 1.000000e+00 : f32
    %47 = vector.broadcast %cst_21 : f32 to vector<2x32xf32>
    %48 = arith.subf %46, %47 : vector<2x32xf32>
    %49 = arith.select %43, %41, %48 : vector<2x32xi1>, vector<2x32xf32>
    %c0_22 = arith.constant 0 : index
    %c0_23 = arith.constant 0 : index
    %50 = vector.load %arg4[%c0_22, %c0_23] : memref<32x32xf32, #tpu.memory_space<vmem>>, vector<32x32xf32>
    %cst_24 = arith.constant dense<0.000000e+00> : vector<2x32xf32>
    %51 = tpu.matmul %49, %50, %cst_24 {dimension_numbers = #tpu.dot_dimension_numbers<[1], [0], [0], [1], [0, 0, 1, 1], [], []>} : vector<2x32xf32>, vector<32x32xf32>, vector<2x32xf32> -> vector<2x32xf32>
    %52 = vector.broadcast %2 : vector<1x32xf32> to vector<2x32xf32>
    %53 = arith.addf %51, %52 : vector<2x32xf32>
    %c0_25 = arith.constant 0 : index
    %c0_26 = arith.constant 0 : index
    %54 = vector.load %arg12[%c0_25, %c0_26] : memref<2x32xf32, #tpu.memory_space<vmem>>, vector<2x32xf32>
    tpu.vector_store %arg12[%c0_25, %c0_26], %53 {strides = array<i32>} : memref<2x32xf32, #tpu.memory_space<vmem>>, vector<2x32xf32>,
    %55 = vector.extract_strided_slice %53 {offsets = [0, 0], sizes = [2, 16], strides = [1, 1]} : vector<2x32xf32> to vector<2x16xf32>
    %56 = vector.extract_strided_slice %53 {offsets = [0, 16], sizes = [2, 16], strides = [1, 1]} : vector<2x32xf32> to vector<2x16xf32>
    %c0_27 = arith.constant 0 : index
    %c0_28 = arith.constant 0 : index
    %57 = vector.load %arg1[%c0_27, %c0_28] : memref<2x16xf32, #tpu.memory_space<vmem>>, vector<2x16xf32>
    %cst_29 = arith.constant 5.000000e-01 : f32
    %58 = vector.broadcast %cst_29 : f32 to vector<2x16xf32>
    %59 = arith.mulf %58, %56 : vector<2x16xf32>
    %60 = math.exp %59 : vector<2x16xf32>
    %61 = arith.mulf %57, %60 : vector<2x16xf32>
    %62 = arith.addf %55, %61 : vector<2x16xf32>
    %c0_30 = arith.constant 0 : index
    %c0_31 = arith.constant 0 : index
    %63 = vector.load %arg5[%c0_30, %c0_31] : memref<16x32xf32, #tpu.memory_space<vmem>>, vector<16x32xf32>
    %cst_32 = arith.constant dense<0.000000e+00> : vector<2x32xf32>
    %64 = tpu.matmul %62, %63, %cst_32 {dimension_numbers = #tpu.dot_dimension_numbers<[1], [0], [0], [1], [0, 0, 1, 1], [], []>} : vector<2x16xf32>, vector<16x32xf32>, vector<2x32xf32> -> vector<2x32xf32>
    %65 = vector.broadcast %3 : vector<1x32xf32> to vector<2x32xf32>
    %66 = arith.addf %64, %65 : vector<2x32xf32>
    %cst_33 = arith.constant 0.000000e+00 : f32
    %67 = vector.broadcast %cst_33 : f32 to vector<2x32xf32>
    %68 = arith.cmpf ogt, %66, %67 : vector<2x32xf32>
    %cst_34 = arith.constant 0.000000e+00 : f32
    %69 = vector.broadcast %cst_34 : f32 to vector<2x32xf32>
    %70 = arith.minimumf %66, %69 : vector<2x32xf32>
    %71 = math.exp %70 : vector<2x32xf32>
    %cst_35 = arith.constant 1.000000e+00 : f32
    %72 = vector.broadcast %cst_35 : f32 to vector<2x32xf32>
    %73 = arith.subf %71, %72 : vector<2x32xf32>
    %74 = arith.select %68, %66, %73 : vector<2x32xi1>, vector<2x32xf32>
    %c0_36 = arith.constant 0 : index
    %c0_37 = arith.constant 0 : index
    %75 = vector.load %arg6[%c0_36, %c0_37] : memref<32x96xf32, #tpu.memory_space<vmem>>, vector<32x96xf32>
    %cst_38 = arith.constant dense<0.000000e+00> : vector<2x96xf32>
    %76 = tpu.matmul %74, %75, %cst_38 {dimension_numbers = #tpu.dot_dimension_numbers<[1], [0], [0], [1], [0, 0, 1, 1], [], []>} : vector<2x32xf32>, vector<32x96xf32>, vector<2x96xf32> -> vector<2x96xf32>
    %77 = vector.extract_strided_slice %76 {offsets = [0, 0], sizes = [2, 32], strides = [1, 1]} : vector<2x96xf32> to vector<2x32xf32>
    %78 = vector.extract_strided_slice %76 {offsets = [0, 32], sizes = [2, 32], strides = [1, 1]} : vector<2x96xf32> to vector<2x32xf32>
    %79 = vector.extract_strided_slice %76 {offsets = [0, 64], sizes = [2, 32], strides = [1, 1]} : vector<2x96xf32> to vector<2x32xf32>
    %80 = vector.broadcast %4 : vector<1x32xf32> to vector<2x32xf32>
    %81 = arith.addf %80, %78 : vector<2x32xf32>
    %82 = arith.addf %81, %79 : vector<2x32xf32>
    %cst_39 = arith.constant 0.000000e+00 : f32
    %83 = vector.broadcast %cst_39 : f32 to vector<2x32xf32>
    %84 = arith.cmpf ogt, %82, %83 : vector<2x32xf32>
    %cst_40 = arith.constant 0.000000e+00 : f32
    %85 = vector.broadcast %cst_40 : f32 to vector<2x32xf32>
    %86 = arith.minimumf %82, %85 : vector<2x32xf32>
    %87 = math.exp %86 : vector<2x32xf32>
    %cst_41 = arith.constant 1.000000e+00 : f32
    %88 = vector.broadcast %cst_41 : f32 to vector<2x32xf32>
    %89 = arith.subf %87, %88 : vector<2x32xf32>
    %90 = arith.select %84, %82, %89 : vector<2x32xi1>, vector<2x32xf32>
    %91 = vector.broadcast %4 : vector<1x32xf32> to vector<2x32xf32>
    %92 = arith.addf %91, %77 : vector<2x32xf32>
    %93 = arith.addf %92, %78 : vector<2x32xf32>
    %94 = arith.addf %93, %79 : vector<2x32xf32>
    %cst_42 = arith.constant 0.000000e+00 : f32
    %95 = vector.broadcast %cst_42 : f32 to vector<2x32xf32>
    %96 = arith.cmpf ogt, %94, %95 : vector<2x32xf32>
    %cst_43 = arith.constant 0.000000e+00 : f32
    %97 = vector.broadcast %cst_43 : f32 to vector<2x32xf32>
    %98 = arith.minimumf %94, %97 : vector<2x32xf32>
    %99 = math.exp %98 : vector<2x32xf32>
    %cst_44 = arith.constant 1.000000e+00 : f32
    %100 = vector.broadcast %cst_44 : f32 to vector<2x32xf32>
    %101 = arith.subf %99, %100 : vector<2x32xf32>
    %102 = arith.select %96, %94, %101 : vector<2x32xi1>, vector<2x32xf32>
    %103 = vector.broadcast %4 : vector<1x32xf32> to vector<2x32xf32>
    %104 = arith.addf %103, %77 : vector<2x32xf32>
    %105 = arith.addf %104, %78 : vector<2x32xf32>
    %cst_45 = arith.constant 0.000000e+00 : f32
    %106 = vector.broadcast %cst_45 : f32 to vector<2x32xf32>
    %107 = arith.cmpf ogt, %105, %106 : vector<2x32xf32>
    %cst_46 = arith.constant 0.000000e+00 : f32
    %108 = vector.broadcast %cst_46 : f32 to vector<2x32xf32>
    %109 = arith.minimumf %105, %108 : vector<2x32xf32>
    %110 = math.exp %109 : vector<2x32xf32>
    %cst_47 = arith.constant 1.000000e+00 : f32
    %111 = vector.broadcast %cst_47 : f32 to vector<2x32xf32>
    %112 = arith.subf %110, %111 : vector<2x32xf32>
    %113 = arith.select %107, %105, %112 : vector<2x32xi1>, vector<2x32xf32>
    %c0_48 = arith.constant 0 : index
    %c0_49 = arith.constant 0 : index
    %114 = vector.load %arg7[%c0_48, %c0_49] : memref<32x100xf32, #tpu.memory_space<vmem>>, vector<32x100xf32>
    %cst_50 = arith.constant dense<0.000000e+00> : vector<2x100xf32>
    %115 = tpu.matmul %90, %114, %cst_50 {dimension_numbers = #tpu.dot_dimension_numbers<[1], [0], [0], [1], [0, 0, 1, 1], [], []>} : vector<2x32xf32>, vector<32x100xf32>, vector<2x100xf32> -> vector<2x100xf32>
    %116 = vector.broadcast %5 : vector<1x100xf32> to vector<2x100xf32>
    %117 = arith.addf %115, %116 : vector<2x100xf32>
    %cst_51 = arith.constant dense<0.000000e+00> : vector<2x100xf32>
    %118 = tpu.matmul %102, %114, %cst_51 {dimension_numbers = #tpu.dot_dimension_numbers<[1], [0], [0], [1], [0, 0, 1, 1], [], []>} : vector<2x32xf32>, vector<32x100xf32>, vector<2x100xf32> -> vector<2x100xf32>
    %119 = vector.broadcast %5 : vector<1x100xf32> to vector<2x100xf32>
    %120 = arith.addf %118, %119 : vector<2x100xf32>
    %cst_52 = arith.constant dense<0.000000e+00> : vector<2x100xf32>
    %121 = tpu.matmul %113, %114, %cst_52 {dimension_numbers = #tpu.dot_dimension_numbers<[1], [0], [0], [1], [0, 0, 1, 1], [], []>} : vector<2x32xf32>, vector<32x100xf32>, vector<2x100xf32> -> vector<2x100xf32>
    %122 = vector.broadcast %5 : vector<1x100xf32> to vector<2x100xf32>
    %123 = arith.addf %121, %122 : vector<2x100xf32>
    %124 = vector.extract_strided_slice %117 {offsets = [0, 0], sizes = [2, 96], strides = [1, 1]} : vector<2x100xf32> to vector<2x96xf32>
    %125 = vector.extract_strided_slice %117 {offsets = [0, 96], sizes = [2, 4], strides = [1, 1]} : vector<2x100xf32> to vector<2x4xf32>
    %126 = vector.extract_strided_slice %120 {offsets = [0, 0], sizes = [2, 96], strides = [1, 1]} : vector<2x100xf32> to vector<2x96xf32>
    %127 = vector.extract_strided_slice %120 {offsets = [0, 96], sizes = [2, 4], strides = [1, 1]} : vector<2x100xf32> to vector<2x4xf32>
    %128 = vector.extract_strided_slice %123 {offsets = [0, 0], sizes = [2, 96], strides = [1, 1]} : vector<2x100xf32> to vector<2x96xf32>
    %129 = vector.extract_strided_slice %123 {offsets = [0, 96], sizes = [2, 4], strides = [1, 1]} : vector<2x100xf32> to vector<2x4xf32>
    %130 = tpu.concatenate %125, %127, %127, %127, %127, %127, %127, %129 in 0 : vector<2x4xf32>, vector<2x4xf32>, vector<2x4xf32>, vector<2x4xf32>, vector<2x4xf32>, vector<2x4xf32>, vector<2x4xf32>, vector<2x4xf32> -> vector<16x4xf32>
    %c0_53 = arith.constant 0 : index
    %c0_54 = arith.constant 0 : index
    %131 = vector.load %arg13[%c0_53, %c0_54] : memref<16x4xf32, #tpu.memory_space<vmem>>, vector<16x4xf32>
    tpu.vector_store %arg13[%c0_53, %c0_54], %130 {strides = array<i32>} : memref<16x4xf32, #tpu.memory_space<vmem>>, vector<16x4xf32>,
    %c0_55 = arith.constant 0 : index
    %c0_56 = arith.constant 0 : index
    %132 = vector.load %arg8[%c0_55, %c0_56] : memref<32x96xf32, #tpu.memory_space<vmem>>, vector<32x96xf32>
    %cst_57 = arith.constant 0.000000e+00 : f32
    %133 = vector.broadcast %cst_57 : f32 to vector<2x32xf32>
    %cst_58 = arith.constant dense<0.000000e+00> : vector<2x96xf32>
    %134 = tpu.matmul %133, %132, %cst_58 {dimension_numbers = #tpu.dot_dimension_numbers<[1], [0], [0], [1], [0, 0, 1, 1], [], []>} : vector<2x32xf32>, vector<32x96xf32>, vector<2x96xf32> -> vector<2x96xf32>
    %135 = vector.broadcast %6 : vector<1x96xf32> to vector<2x96xf32>
    %136 = arith.addf %134, %135 : vector<2x96xf32>
    %137 = vector.extract_strided_slice %124 {offsets = [0, 0], sizes = [2, 32], strides = [1, 1]} : vector<2x96xf32> to vector<2x32xf32>
    %138 = vector.extract_strided_slice %136 {offsets = [0, 0], sizes = [2, 32], strides = [1, 1]} : vector<2x96xf32> to vector<2x32xf32>
    %139 = arith.addf %137, %138 : vector<2x32xf32>
    %cst_59 = arith.constant 5.000000e-01 : f32
    %140 = vector.broadcast %cst_59 : f32 to vector<2x32xf32>
    %141 = arith.mulf %140, %139 : vector<2x32xf32>
    %142 = math.tanh %141 : vector<2x32xf32>
    %cst_60 = arith.constant 1.000000e+00 : f32
    %143 = vector.broadcast %cst_60 : f32 to vector<2x32xf32>
    %144 = arith.addf %142, %143 : vector<2x32xf32>
    %cst_61 = arith.constant 5.000000e-01 : f32
    %145 = vector.broadcast %cst_61 : f32 to vector<2x32xf32>
    %146 = arith.mulf %145, %144 : vector<2x32xf32>
    %147 = vector.extract_strided_slice %124 {offsets = [0, 32], sizes = [2, 32], strides = [1, 1]} : vector<2x96xf32> to vector<2x32xf32>
    %148 = vector.extract_strided_slice %136 {offsets = [0, 32], sizes = [2, 32], strides = [1, 1]} : vector<2x96xf32> to vector<2x32xf32>
    %149 = arith.addf %147, %148 : vector<2x32xf32>
    %cst_62 = arith.constant 5.000000e-01 : f32
    %150 = vector.broadcast %cst_62 : f32 to vector<2x32xf32>
    %151 = arith.mulf %150, %149 : vector<2x32xf32>
    %152 = math.tanh %151 : vector<2x32xf32>
    %cst_63 = arith.constant 1.000000e+00 : f32
    %153 = vector.broadcast %cst_63 : f32 to vector<2x32xf32>
    %154 = arith.addf %152, %153 : vector<2x32xf32>
    %cst_64 = arith.constant 5.000000e-01 : f32
    %155 = vector.broadcast %cst_64 : f32 to vector<2x32xf32>
    %156 = arith.mulf %155, %154 : vector<2x32xf32>
    %157 = vector.extract_strided_slice %124 {offsets = [0, 64], sizes = [2, 32], strides = [1, 1]} : vector<2x96xf32> to vector<2x32xf32>
    %158 = vector.extract_strided_slice %136 {offsets = [0, 64], sizes = [2, 32], strides = [1, 1]} : vector<2x96xf32> to vector<2x32xf32>
    %159 = arith.mulf %146, %158 : vector<2x32xf32>
    %160 = arith.addf %157, %159 : vector<2x32xf32>
    %161 = math.tanh %160 : vector<2x32xf32>
    %cst_65 = arith.constant 1.000000e+00 : f32
    %162 = vector.broadcast %cst_65 : f32 to vector<2x32xf32>
    %163 = arith.subf %162, %156 : vector<2x32xf32>
    %164 = arith.mulf %163, %161 : vector<2x32xf32>
    %165 = arith.mulf %156, %133 : vector<2x32xf32>
    %166 = arith.addf %164, %165 : vector<2x32xf32>
    %c0_66 = arith.constant 0 : index
    %c0_67 = arith.constant 0 : index
    %167 = vector.load %arg14[%c0_66, %c0_67] : memref<16x32xf32, #tpu.memory_space<vmem>>, vector<2x32xf32>
    tpu.vector_store %arg14[%c0_66, %c0_67], %166 {strides = array<i32>} : memref<16x32xf32, #tpu.memory_space<vmem>>, vector<2x32xf32>,
    %cst_68 = arith.constant dense<0.000000e+00> : vector<2x96xf32>
    %168 = tpu.matmul %166, %132, %cst_68 {dimension_numbers = #tpu.dot_dimension_numbers<[1], [0], [0], [1], [0, 0, 1, 1], [], []>} : vector<2x32xf32>, vector<32x96xf32>, vector<2x96xf32> -> vector<2x96xf32>
    %169 = vector.broadcast %6 : vector<1x96xf32> to vector<2x96xf32>
    %170 = arith.addf %168, %169 : vector<2x96xf32>
    %171 = vector.extract_strided_slice %126 {offsets = [0, 0], sizes = [2, 32], strides = [1, 1]} : vector<2x96xf32> to vector<2x32xf32>
    %172 = vector.extract_strided_slice %170 {offsets = [0, 0], sizes = [2, 32], strides = [1, 1]} : vector<2x96xf32> to vector<2x32xf32>
    %173 = arith.addf %171, %172 : vector<2x32xf32>
    %cst_69 = arith.constant 5.000000e-01 : f32
    %174 = vector.broadcast %cst_69 : f32 to vector<2x32xf32>
    %175 = arith.mulf %174, %173 : vector<2x32xf32>
    %176 = math.tanh %175 : vector<2x32xf32>
    %cst_70 = arith.constant 1.000000e+00 : f32
    %177 = vector.broadcast %cst_70 : f32 to vector<2x32xf32>
    %178 = arith.addf %176, %177 : vector<2x32xf32>
    %cst_71 = arith.constant 5.000000e-01 : f32
    %179 = vector.broadcast %cst_71 : f32 to vector<2x32xf32>
    %180 = arith.mulf %179, %178 : vector<2x32xf32>
    %181 = vector.extract_strided_slice %126 {offsets = [0, 32], sizes = [2, 32], strides = [1, 1]} : vector<2x96xf32> to vector<2x32xf32>
    %182 = vector.extract_strided_slice %170 {offsets = [0, 32], sizes = [2, 32], strides = [1, 1]} : vector<2x96xf32> to vector<2x32xf32>
    %183 = arith.addf %181, %182 : vector<2x32xf32>
    %cst_72 = arith.constant 5.000000e-01 : f32
    %184 = vector.broadcast %cst_72 : f32 to vector<2x32xf32>
    %185 = arith.mulf %184, %183 : vector<2x32xf32>
    %186 = math.tanh %185 : vector<2x32xf32>
    %cst_73 = arith.constant 1.000000e+00 : f32
    %187 = vector.broadcast %cst_73 : f32 to vector<2x32xf32>
    %188 = arith.addf %186, %187 : vector<2x32xf32>
    %cst_74 = arith.constant 5.000000e-01 : f32
    %189 = vector.broadcast %cst_74 : f32 to vector<2x32xf32>
    %190 = arith.mulf %189, %188 : vector<2x32xf32>
    %191 = vector.extract_strided_slice %126 {offsets = [0, 64], sizes = [2, 32], strides = [1, 1]} : vector<2x96xf32> to vector<2x32xf32>
    %192 = vector.extract_strided_slice %170 {offsets = [0, 64], sizes = [2, 32], strides = [1, 1]} : vector<2x96xf32> to vector<2x32xf32>
    %193 = arith.mulf %180, %192 : vector<2x32xf32>
    %194 = arith.addf %191, %193 : vector<2x32xf32>
    %195 = math.tanh %194 : vector<2x32xf32>
    %cst_75 = arith.constant 1.000000e+00 : f32
    %196 = vector.broadcast %cst_75 : f32 to vector<2x32xf32>
    %197 = arith.subf %196, %190 : vector<2x32xf32>
    %198 = arith.mulf %197, %195 : vector<2x32xf32>
    %199 = arith.mulf %190, %166 : vector<2x32xf32>
    %200 = arith.addf %198, %199 : vector<2x32xf32>
    %c2 = arith.constant 2 : index
    %c0_76 = arith.constant 0 : index
    %201 = vector.load %arg14[%c2, %c0_76] : memref<16x32xf32, #tpu.memory_space<vmem>>, vector<2x32xf32>
    tpu.vector_store %arg14[%c2, %c0_76], %200 {strides = array<i32>} : memref<16x32xf32, #tpu.memory_space<vmem>>, vector<2x32xf32>,
    %cst_77 = arith.constant dense<0.000000e+00> : vector<2x96xf32>
    %202 = tpu.matmul %200, %132, %cst_77 {dimension_numbers = #tpu.dot_dimension_numbers<[1], [0], [0], [1], [0, 0, 1, 1], [], []>} : vector<2x32xf32>, vector<32x96xf32>, vector<2x96xf32> -> vector<2x96xf32>
    %203 = vector.broadcast %6 : vector<1x96xf32> to vector<2x96xf32>
    %204 = arith.addf %202, %203 : vector<2x96xf32>
    %205 = vector.extract_strided_slice %126 {offsets = [0, 0], sizes = [2, 32], strides = [1, 1]} : vector<2x96xf32> to vector<2x32xf32>
    %206 = vector.extract_strided_slice %204 {offsets = [0, 0], sizes = [2, 32], strides = [1, 1]} : vector<2x96xf32> to vector<2x32xf32>
    %207 = arith.addf %205, %206 : vector<2x32xf32>
    %cst_78 = arith.constant 5.000000e-01 : f32
    %208 = vector.broadcast %cst_78 : f32 to vector<2x32xf32>
    %209 = arith.mulf %208, %207 : vector<2x32xf32>
    %210 = math.tanh %209 : vector<2x32xf32>
    %cst_79 = arith.constant 1.000000e+00 : f32
    %211 = vector.broadcast %cst_79 : f32 to vector<2x32xf32>
    %212 = arith.addf %210, %211 : vector<2x32xf32>
    %cst_80 = arith.constant 5.000000e-01 : f32
    %213 = vector.broadcast %cst_80 : f32 to vector<2x32xf32>
    %214 = arith.mulf %213, %212 : vector<2x32xf32>
    %215 = vector.extract_strided_slice %126 {offsets = [0, 32], sizes = [2, 32], strides = [1, 1]} : vector<2x96xf32> to vector<2x32xf32>
    %216 = vector.extract_strided_slice %204 {offsets = [0, 32], sizes = [2, 32], strides = [1, 1]} : vector<2x96xf32> to vector<2x32xf32>
    %217 = arith.addf %215, %216 : vector<2x32xf32>
    %cst_81 = arith.constant 5.000000e-01 : f32
    %218 = vector.broadcast %cst_81 : f32 to vector<2x32xf32>
    %219 = arith.mulf %218, %217 : vector<2x32xf32>
    %220 = math.tanh %219 : vector<2x32xf32>
    %cst_82 = arith.constant 1.000000e+00 : f32
    %221 = vector.broadcast %cst_82 : f32 to vector<2x32xf32>
    %222 = arith.addf %220, %221 : vector<2x32xf32>
    %cst_83 = arith.constant 5.000000e-01 : f32
    %223 = vector.broadcast %cst_83 : f32 to vector<2x32xf32>
    %224 = arith.mulf %223, %222 : vector<2x32xf32>
    %225 = vector.extract_strided_slice %126 {offsets = [0, 64], sizes = [2, 32], strides = [1, 1]} : vector<2x96xf32> to vector<2x32xf32>
    %226 = vector.extract_strided_slice %204 {offsets = [0, 64], sizes = [2, 32], strides = [1, 1]} : vector<2x96xf32> to vector<2x32xf32>
    %227 = arith.mulf %214, %226 : vector<2x32xf32>
    %228 = arith.addf %225, %227 : vector<2x32xf32>
    %229 = math.tanh %228 : vector<2x32xf32>
    %cst_84 = arith.constant 1.000000e+00 : f32
    %230 = vector.broadcast %cst_84 : f32 to vector<2x32xf32>
    %231 = arith.subf %230, %224 : vector<2x32xf32>
    %232 = arith.mulf %231, %229 : vector<2x32xf32>
    %233 = arith.mulf %224, %200 : vector<2x32xf32>
    %234 = arith.addf %232, %233 : vector<2x32xf32>
    %c4 = arith.constant 4 : index
    %c0_85 = arith.constant 0 : index
    %235 = vector.load %arg14[%c4, %c0_85] : memref<16x32xf32, #tpu.memory_space<vmem>>, vector<2x32xf32>
    tpu.vector_store %arg14[%c4, %c0_85], %234 {strides = array<i32>} : memref<16x32xf32, #tpu.memory_space<vmem>>, vector<2x32xf32>,
    %cst_86 = arith.constant dense<0.000000e+00> : vector<2x96xf32>
    %236 = tpu.matmul %234, %132, %cst_86 {dimension_numbers = #tpu.dot_dimension_numbers<[1], [0], [0], [1], [0, 0, 1, 1], [], []>} : vector<2x32xf32>, vector<32x96xf32>, vector<2x96xf32> -> vector<2x96xf32>
    %237 = vector.broadcast %6 : vector<1x96xf32> to vector<2x96xf32>
    %238 = arith.addf %236, %237 : vector<2x96xf32>
    %239 = vector.extract_strided_slice %126 {offsets = [0, 0], sizes = [2, 32], strides = [1, 1]} : vector<2x96xf32> to vector<2x32xf32>
    %240 = vector.extract_strided_slice %238 {offsets = [0, 0], sizes = [2, 32], strides = [1, 1]} : vector<2x96xf32> to vector<2x32xf32>
    %241 = arith.addf %239, %240 : vector<2x32xf32>
    %cst_87 = arith.constant 5.000000e-01 : f32
    %242 = vector.broadcast %cst_87 : f32 to vector<2x32xf32>
    %243 = arith.mulf %242, %241 : vector<2x32xf32>
    %244 = math.tanh %243 : vector<2x32xf32>
    %cst_88 = arith.constant 1.000000e+00 : f32
    %245 = vector.broadcast %cst_88 : f32 to vector<2x32xf32>
    %246 = arith.addf %244, %245 : vector<2x32xf32>
    %cst_89 = arith.constant 5.000000e-01 : f32
    %247 = vector.broadcast %cst_89 : f32 to vector<2x32xf32>
    %248 = arith.mulf %247, %246 : vector<2x32xf32>
    %249 = vector.extract_strided_slice %126 {offsets = [0, 32], sizes = [2, 32], strides = [1, 1]} : vector<2x96xf32> to vector<2x32xf32>
    %250 = vector.extract_strided_slice %238 {offsets = [0, 32], sizes = [2, 32], strides = [1, 1]} : vector<2x96xf32> to vector<2x32xf32>
    %251 = arith.addf %249, %250 : vector<2x32xf32>
    %cst_90 = arith.constant 5.000000e-01 : f32
    %252 = vector.broadcast %cst_90 : f32 to vector<2x32xf32>
    %253 = arith.mulf %252, %251 : vector<2x32xf32>
    %254 = math.tanh %253 : vector<2x32xf32>
    %cst_91 = arith.constant 1.000000e+00 : f32
    %255 = vector.broadcast %cst_91 : f32 to vector<2x32xf32>
    %256 = arith.addf %254, %255 : vector<2x32xf32>
    %cst_92 = arith.constant 5.000000e-01 : f32
    %257 = vector.broadcast %cst_92 : f32 to vector<2x32xf32>
    %258 = arith.mulf %257, %256 : vector<2x32xf32>
    %259 = vector.extract_strided_slice %126 {offsets = [0, 64], sizes = [2, 32], strides = [1, 1]} : vector<2x96xf32> to vector<2x32xf32>
    %260 = vector.extract_strided_slice %238 {offsets = [0, 64], sizes = [2, 32], strides = [1, 1]} : vector<2x96xf32> to vector<2x32xf32>
    %261 = arith.mulf %248, %260 : vector<2x32xf32>
    %262 = arith.addf %259, %261 : vector<2x32xf32>
    %263 = math.tanh %262 : vector<2x32xf32>
    %cst_93 = arith.constant 1.000000e+00 : f32
    %264 = vector.broadcast %cst_93 : f32 to vector<2x32xf32>
    %265 = arith.subf %264, %258 : vector<2x32xf32>
    %266 = arith.mulf %265, %263 : vector<2x32xf32>
    %267 = arith.mulf %258, %234 : vector<2x32xf32>
    %268 = arith.addf %266, %267 : vector<2x32xf32>
    %c6 = arith.constant 6 : index
    %c0_94 = arith.constant 0 : index
    %269 = vector.load %arg14[%c6, %c0_94] : memref<16x32xf32, #tpu.memory_space<vmem>>, vector<2x32xf32>
    tpu.vector_store %arg14[%c6, %c0_94], %268 {strides = array<i32>} : memref<16x32xf32, #tpu.memory_space<vmem>>, vector<2x32xf32>,
    %cst_95 = arith.constant dense<0.000000e+00> : vector<2x96xf32>
    %270 = tpu.matmul %268, %132, %cst_95 {dimension_numbers = #tpu.dot_dimension_numbers<[1], [0], [0], [1], [0, 0, 1, 1], [], []>} : vector<2x32xf32>, vector<32x96xf32>, vector<2x96xf32> -> vector<2x96xf32>
    %271 = vector.broadcast %6 : vector<1x96xf32> to vector<2x96xf32>
    %272 = arith.addf %270, %271 : vector<2x96xf32>
    %273 = vector.extract_strided_slice %126 {offsets = [0, 0], sizes = [2, 32], strides = [1, 1]} : vector<2x96xf32> to vector<2x32xf32>
    %274 = vector.extract_strided_slice %272 {offsets = [0, 0], sizes = [2, 32], strides = [1, 1]} : vector<2x96xf32> to vector<2x32xf32>
    %275 = arith.addf %273, %274 : vector<2x32xf32>
    %cst_96 = arith.constant 5.000000e-01 : f32
    %276 = vector.broadcast %cst_96 : f32 to vector<2x32xf32>
    %277 = arith.mulf %276, %275 : vector<2x32xf32>
    %278 = math.tanh %277 : vector<2x32xf32>
    %cst_97 = arith.constant 1.000000e+00 : f32
    %279 = vector.broadcast %cst_97 : f32 to vector<2x32xf32>
    %280 = arith.addf %278, %279 : vector<2x32xf32>
    %cst_98 = arith.constant 5.000000e-01 : f32
    %281 = vector.broadcast %cst_98 : f32 to vector<2x32xf32>
    %282 = arith.mulf %281, %280 : vector<2x32xf32>
    %283 = vector.extract_strided_slice %126 {offsets = [0, 32], sizes = [2, 32], strides = [1, 1]} : vector<2x96xf32> to vector<2x32xf32>
    %284 = vector.extract_strided_slice %272 {offsets = [0, 32], sizes = [2, 32], strides = [1, 1]} : vector<2x96xf32> to vector<2x32xf32>
    %285 = arith.addf %283, %284 : vector<2x32xf32>
    %cst_99 = arith.constant 5.000000e-01 : f32
    %286 = vector.broadcast %cst_99 : f32 to vector<2x32xf32>
    %287 = arith.mulf %286, %285 : vector<2x32xf32>
    %288 = math.tanh %287 : vector<2x32xf32>
    %cst_100 = arith.constant 1.000000e+00 : f32
    %289 = vector.broadcast %cst_100 : f32 to vector<2x32xf32>
    %290 = arith.addf %288, %289 : vector<2x32xf32>
    %cst_101 = arith.constant 5.000000e-01 : f32
    %291 = vector.broadcast %cst_101 : f32 to vector<2x32xf32>
    %292 = arith.mulf %291, %290 : vector<2x32xf32>
    %293 = vector.extract_strided_slice %126 {offsets = [0, 64], sizes = [2, 32], strides = [1, 1]} : vector<2x96xf32> to vector<2x32xf32>
    %294 = vector.extract_strided_slice %272 {offsets = [0, 64], sizes = [2, 32], strides = [1, 1]} : vector<2x96xf32> to vector<2x32xf32>
    %295 = arith.mulf %282, %294 : vector<2x32xf32>
    %296 = arith.addf %293, %295 : vector<2x32xf32>
    %297 = math.tanh %296 : vector<2x32xf32>
    %cst_102 = arith.constant 1.000000e+00 : f32
    %298 = vector.broadcast %cst_102 : f32 to vector<2x32xf32>
    %299 = arith.subf %298, %292 : vector<2x32xf32>
    %300 = arith.mulf %299, %297 : vector<2x32xf32>
    %301 = arith.mulf %292, %268 : vector<2x32xf32>
    %302 = arith.addf %300, %301 : vector<2x32xf32>
    %c8 = arith.constant 8 : index
    %c0_103 = arith.constant 0 : index
    %303 = vector.load %arg14[%c8, %c0_103] : memref<16x32xf32, #tpu.memory_space<vmem>>, vector<2x32xf32>
    tpu.vector_store %arg14[%c8, %c0_103], %302 {strides = array<i32>} : memref<16x32xf32, #tpu.memory_space<vmem>>, vector<2x32xf32>,
    %cst_104 = arith.constant dense<0.000000e+00> : vector<2x96xf32>
    %304 = tpu.matmul %302, %132, %cst_104 {dimension_numbers = #tpu.dot_dimension_numbers<[1], [0], [0], [1], [0, 0, 1, 1], [], []>} : vector<2x32xf32>, vector<32x96xf32>, vector<2x96xf32> -> vector<2x96xf32>
    %305 = vector.broadcast %6 : vector<1x96xf32> to vector<2x96xf32>
    %306 = arith.addf %304, %305 : vector<2x96xf32>
    %307 = vector.extract_strided_slice %126 {offsets = [0, 0], sizes = [2, 32], strides = [1, 1]} : vector<2x96xf32> to vector<2x32xf32>
    %308 = vector.extract_strided_slice %306 {offsets = [0, 0], sizes = [2, 32], strides = [1, 1]} : vector<2x96xf32> to vector<2x32xf32>
    %309 = arith.addf %307, %308 : vector<2x32xf32>
    %cst_105 = arith.constant 5.000000e-01 : f32
    %310 = vector.broadcast %cst_105 : f32 to vector<2x32xf32>
    %311 = arith.mulf %310, %309 : vector<2x32xf32>
    %312 = math.tanh %311 : vector<2x32xf32>
    %cst_106 = arith.constant 1.000000e+00 : f32
    %313 = vector.broadcast %cst_106 : f32 to vector<2x32xf32>
    %314 = arith.addf %312, %313 : vector<2x32xf32>
    %cst_107 = arith.constant 5.000000e-01 : f32
    %315 = vector.broadcast %cst_107 : f32 to vector<2x32xf32>
    %316 = arith.mulf %315, %314 : vector<2x32xf32>
    %317 = vector.extract_strided_slice %126 {offsets = [0, 32], sizes = [2, 32], strides = [1, 1]} : vector<2x96xf32> to vector<2x32xf32>
    %318 = vector.extract_strided_slice %306 {offsets = [0, 32], sizes = [2, 32], strides = [1, 1]} : vector<2x96xf32> to vector<2x32xf32>
    %319 = arith.addf %317, %318 : vector<2x32xf32>
    %cst_108 = arith.constant 5.000000e-01 : f32
    %320 = vector.broadcast %cst_108 : f32 to vector<2x32xf32>
    %321 = arith.mulf %320, %319 : vector<2x32xf32>
    %322 = math.tanh %321 : vector<2x32xf32>
    %cst_109 = arith.constant 1.000000e+00 : f32
    %323 = vector.broadcast %cst_109 : f32 to vector<2x32xf32>
    %324 = arith.addf %322, %323 : vector<2x32xf32>
    %cst_110 = arith.constant 5.000000e-01 : f32
    %325 = vector.broadcast %cst_110 : f32 to vector<2x32xf32>
    %326 = arith.mulf %325, %324 : vector<2x32xf32>
    %327 = vector.extract_strided_slice %126 {offsets = [0, 64], sizes = [2, 32], strides = [1, 1]} : vector<2x96xf32> to vector<2x32xf32>
    %328 = vector.extract_strided_slice %306 {offsets = [0, 64], sizes = [2, 32], strides = [1, 1]} : vector<2x96xf32> to vector<2x32xf32>
    %329 = arith.mulf %316, %328 : vector<2x32xf32>
    %330 = arith.addf %327, %329 : vector<2x32xf32>
    %331 = math.tanh %330 : vector<2x32xf32>
    %cst_111 = arith.constant 1.000000e+00 : f32
    %332 = vector.broadcast %cst_111 : f32 to vector<2x32xf32>
    %333 = arith.subf %332, %326 : vector<2x32xf32>
    %334 = arith.mulf %333, %331 : vector<2x32xf32>
    %335 = arith.mulf %326, %302 : vector<2x32xf32>
    %336 = arith.addf %334, %335 : vector<2x32xf32>
    %c10 = arith.constant 10 : index
    %c0_112 = arith.constant 0 : index
    %337 = vector.load %arg14[%c10, %c0_112] : memref<16x32xf32, #tpu.memory_space<vmem>>, vector<2x32xf32>
    tpu.vector_store %arg14[%c10, %c0_112], %336 {strides = array<i32>} : memref<16x32xf32, #tpu.memory_space<vmem>>, vector<2x32xf32>,
    %cst_113 = arith.constant dense<0.000000e+00> : vector<2x96xf32>
    %338 = tpu.matmul %336, %132, %cst_113 {dimension_numbers = #tpu.dot_dimension_numbers<[1], [0], [0], [1], [0, 0, 1, 1], [], []>} : vector<2x32xf32>, vector<32x96xf32>, vector<2x96xf32> -> vector<2x96xf32>
    %339 = vector.broadcast %6 : vector<1x96xf32> to vector<2x96xf32>
    %340 = arith.addf %338, %339 : vector<2x96xf32>
    %341 = vector.extract_strided_slice %126 {offsets = [0, 0], sizes = [2, 32], strides = [1, 1]} : vector<2x96xf32> to vector<2x32xf32>
    %342 = vector.extract_strided_slice %340 {offsets = [0, 0], sizes = [2, 32], strides = [1, 1]} : vector<2x96xf32> to vector<2x32xf32>
    %343 = arith.addf %341, %342 : vector<2x32xf32>
    %cst_114 = arith.constant 5.000000e-01 : f32
    %344 = vector.broadcast %cst_114 : f32 to vector<2x32xf32>
    %345 = arith.mulf %344, %343 : vector<2x32xf32>
    %346 = math.tanh %345 : vector<2x32xf32>
    %cst_115 = arith.constant 1.000000e+00 : f32
    %347 = vector.broadcast %cst_115 : f32 to vector<2x32xf32>
    %348 = arith.addf %346, %347 : vector<2x32xf32>
    %cst_116 = arith.constant 5.000000e-01 : f32
    %349 = vector.broadcast %cst_116 : f32 to vector<2x32xf32>
    %350 = arith.mulf %349, %348 : vector<2x32xf32>
    %351 = vector.extract_strided_slice %126 {offsets = [0, 32], sizes = [2, 32], strides = [1, 1]} : vector<2x96xf32> to vector<2x32xf32>
    %352 = vector.extract_strided_slice %340 {offsets = [0, 32], sizes = [2, 32], strides = [1, 1]} : vector<2x96xf32> to vector<2x32xf32>
    %353 = arith.addf %351, %352 : vector<2x32xf32>
    %cst_117 = arith.constant 5.000000e-01 : f32
    %354 = vector.broadcast %cst_117 : f32 to vector<2x32xf32>
    %355 = arith.mulf %354, %353 : vector<2x32xf32>
    %356 = math.tanh %355 : vector<2x32xf32>
    %cst_118 = arith.constant 1.000000e+00 : f32
    %357 = vector.broadcast %cst_118 : f32 to vector<2x32xf32>
    %358 = arith.addf %356, %357 : vector<2x32xf32>
    %cst_119 = arith.constant 5.000000e-01 : f32
    %359 = vector.broadcast %cst_119 : f32 to vector<2x32xf32>
    %360 = arith.mulf %359, %358 : vector<2x32xf32>
    %361 = vector.extract_strided_slice %126 {offsets = [0, 64], sizes = [2, 32], strides = [1, 1]} : vector<2x96xf32> to vector<2x32xf32>
    %362 = vector.extract_strided_slice %340 {offsets = [0, 64], sizes = [2, 32], strides = [1, 1]} : vector<2x96xf32> to vector<2x32xf32>
    %363 = arith.mulf %350, %362 : vector<2x32xf32>
    %364 = arith.addf %361, %363 : vector<2x32xf32>
    %365 = math.tanh %364 : vector<2x32xf32>
    %cst_120 = arith.constant 1.000000e+00 : f32
    %366 = vector.broadcast %cst_120 : f32 to vector<2x32xf32>
    %367 = arith.subf %366, %360 : vector<2x32xf32>
    %368 = arith.mulf %367, %365 : vector<2x32xf32>
    %369 = arith.mulf %360, %336 : vector<2x32xf32>
    %370 = arith.addf %368, %369 : vector<2x32xf32>
    %c12 = arith.constant 12 : index
    %c0_121 = arith.constant 0 : index
    %371 = vector.load %arg14[%c12, %c0_121] : memref<16x32xf32, #tpu.memory_space<vmem>>, vector<2x32xf32>
    tpu.vector_store %arg14[%c12, %c0_121], %370 {strides = array<i32>} : memref<16x32xf32, #tpu.memory_space<vmem>>, vector<2x32xf32>,
    %cst_122 = arith.constant dense<0.000000e+00> : vector<2x96xf32>
    %372 = tpu.matmul %370, %132, %cst_122 {dimension_numbers = #tpu.dot_dimension_numbers<[1], [0], [0], [1], [0, 0, 1, 1], [], []>} : vector<2x32xf32>, vector<32x96xf32>, vector<2x96xf32> -> vector<2x96xf32>
    %373 = vector.broadcast %6 : vector<1x96xf32> to vector<2x96xf32>
    %374 = arith.addf %372, %373 : vector<2x96xf32>
    %375 = vector.extract_strided_slice %128 {offsets = [0, 0], sizes = [2, 32], strides = [1, 1]} : vector<2x96xf32> to vector<2x32xf32>
    %376 = vector.extract_strided_slice %374 {offsets = [0, 0], sizes = [2, 32], strides = [1, 1]} : vector<2x96xf32> to vector<2x32xf32>
    %377 = arith.addf %375, %376 : vector<2x32xf32>
    %cst_123 = arith.constant 5.000000e-01 : f32
    %378 = vector.broadcast %cst_123 : f32 to vector<2x32xf32>
    %379 = arith.mulf %378, %377 : vector<2x32xf32>
    %380 = math.tanh %379 : vector<2x32xf32>
    %cst_124 = arith.constant 1.000000e+00 : f32
    %381 = vector.broadcast %cst_124 : f32 to vector<2x32xf32>
    %382 = arith.addf %380, %381 : vector<2x32xf32>
    %cst_125 = arith.constant 5.000000e-01 : f32
    %383 = vector.broadcast %cst_125 : f32 to vector<2x32xf32>
    %384 = arith.mulf %383, %382 : vector<2x32xf32>
    %385 = vector.extract_strided_slice %128 {offsets = [0, 32], sizes = [2, 32], strides = [1, 1]} : vector<2x96xf32> to vector<2x32xf32>
    %386 = vector.extract_strided_slice %374 {offsets = [0, 32], sizes = [2, 32], strides = [1, 1]} : vector<2x96xf32> to vector<2x32xf32>
    %387 = arith.addf %385, %386 : vector<2x32xf32>
    %cst_126 = arith.constant 5.000000e-01 : f32
    %388 = vector.broadcast %cst_126 : f32 to vector<2x32xf32>
    %389 = arith.mulf %388, %387 : vector<2x32xf32>
    %390 = math.tanh %389 : vector<2x32xf32>
    %cst_127 = arith.constant 1.000000e+00 : f32
    %391 = vector.broadcast %cst_127 : f32 to vector<2x32xf32>
    %392 = arith.addf %390, %391 : vector<2x32xf32>
    %cst_128 = arith.constant 5.000000e-01 : f32
    %393 = vector.broadcast %cst_128 : f32 to vector<2x32xf32>
    %394 = arith.mulf %393, %392 : vector<2x32xf32>
    %395 = vector.extract_strided_slice %128 {offsets = [0, 64], sizes = [2, 32], strides = [1, 1]} : vector<2x96xf32> to vector<2x32xf32>
    %396 = vector.extract_strided_slice %374 {offsets = [0, 64], sizes = [2, 32], strides = [1, 1]} : vector<2x96xf32> to vector<2x32xf32>
    %397 = arith.mulf %384, %396 : vector<2x32xf32>
    %398 = arith.addf %395, %397 : vector<2x32xf32>
    %399 = math.tanh %398 : vector<2x32xf32>
    %cst_129 = arith.constant 1.000000e+00 : f32
    %400 = vector.broadcast %cst_129 : f32 to vector<2x32xf32>
    %401 = arith.subf %400, %394 : vector<2x32xf32>
    %402 = arith.mulf %401, %399 : vector<2x32xf32>
    %403 = arith.mulf %394, %370 : vector<2x32xf32>
    %404 = arith.addf %402, %403 : vector<2x32xf32>
    %c14 = arith.constant 14 : index
    %c0_130 = arith.constant 0 : index
    %405 = vector.load %arg14[%c14, %c0_130] : memref<16x32xf32, #tpu.memory_space<vmem>>, vector<2x32xf32>
    tpu.vector_store %arg14[%c14, %c0_130], %404 {strides = array<i32>} : memref<16x32xf32, #tpu.memory_space<vmem>>, vector<2x32xf32>,
    %c0_131 = arith.constant 0 : index
    %c0_132 = arith.constant 0 : index
    %406 = vector.load %arg14[%c0_131, %c0_132] : memref<16x32xf32, #tpu.memory_space<vmem>>, vector<16x32xf32>
    %c0_133 = arith.constant 0 : index
    %c0_134 = arith.constant 0 : index
    %407 = vector.load %arg9[%c0_133, %c0_134] : memref<32x4xf32, #tpu.memory_space<vmem>>, vector<32x4xf32>
    %cst_135 = arith.constant dense<0.000000e+00> : vector<16x4xf32>
    %408 = tpu.matmul %406, %407, %cst_135 {dimension_numbers = #tpu.dot_dimension_numbers<[1], [0], [0], [1], [0, 0, 1, 1], [], []>} : vector<16x32xf32>, vector<32x4xf32>, vector<16x4xf32> -> vector<16x4xf32>
    %409 = vector.broadcast %7 : vector<1x4xf32> to vector<16x4xf32>
    %410 = arith.addf %408, %409 : vector<16x4xf32>
    %c0_136 = arith.constant 0 : index
    %c0_137 = arith.constant 0 : index
    %411 = vector.load %arg11[%c0_136, %c0_137] : memref<16x4xf32, #tpu.memory_space<vmem>>, vector<16x4xf32>
    tpu.vector_store %arg11[%c0_136, %c0_137], %410 {strides = array<i32>} : memref<16x4xf32, #tpu.memory_space<vmem>>, vector<16x4xf32>,
    return
  }
}

</mosaic_0001>

<bundles_post_ra>
// kernel: tpu_custom_call.1
= control target key start
LH: loop header
LB: loop body
LE: loop exit
PB: predicated region body
PF: predicated region fallthrough
CT: control target
= control target key end

     0   :  { %19 = vsyncpa [#allocation4], 0  ;;  %s2978_s0 = inlined_call_operand.hbm [shape: f32[16,12], index: 0, kind: input, shape index: {}]   ;;  %s2979_s1 = inlined_call_operand.hbm [shape: f32[2,16], index: 1, kind: input, shape index: {}]   ;;  %s2980_s2 = inlined_call_operand.hbm [shape: f32[12,32], index: 2, kind: input, shape index: {}]   ;;  %s2981_s3 = inlined_call_operand.vmem [shape: f32[32,32], index: 3, kind: input, shape index: {}]   ;;  %s2982_s4 = inlined_call_operand.hbm [shape: f32[32,32], index: 4, kind: input, shape index: {}]   ;;  %s2983_s5 = inlined_call_operand.hbm [shape: f32[16,32], index: 5, kind: input, shape index: {}]   ;;  %s2984_s6 = inlined_call_operand.hbm [shape: f32[32,96], index: 6, kind: input, shape index: {}]   ;;  %s2985_s7 = inlined_call_operand.hbm [shape: f32[32,100], index: 7, kind: input, shape index: {}]   ;;  %s2986_s8 = inlined_call_operand.vmem [shape: f32[32,96], index: 8, kind: input, shape index: {}]   ;;  %s2987_s9 = inlined_call_operand.vmem [shape: f32[32,4], index: 9, kind: input, shape index: {}]   ;;  %s2988_s10 = inlined_call_operand.vmem [shape: f32[1,1024], index: 10, kind: input, shape index: {}]   ;;  %s2989_s11 = inlined_call_operand.vmem [shape: f32[16,4], index: 11, kind: output, shape index: {0}]   ;;  %s2990_s12 = inlined_call_operand.hbm [shape: f32[2,32], index: 12, kind: output, shape index: {1}]   ;;  %s2991_s13 = inlined_call_operand.vmem [shape: f32[16,4], index: 13, kind: output, shape index: {2}]  }
   0x1   :  { %20 = vsyncpa [#allocation7], 0 }
   0x2   :  { %21 = vsyncpa [#allocation10], 0 }
   0x3   :  { %22 = vsyncpa [#allocation13], 0 }
   0x4   :  { %23 = vsyncpa [#allocation5], 0  ;;  %s2506_s25 = smov [#allocation6]   ;;  %s2320_s29 = scalar_lea.hbm %s2979_s1, 32 }
   0x5   :  { %s42_s26 = sshll.u32 %s2506_s25, 4  ;;  %p2321_p0 = scmp.ne.s32.totalorder %s2979_s1, %s2320_s29  ;;  %s43_s26 = int_to_ptr.vmem [resolvable:$true] %s42_s26 }
   0x6   :  { %p2324_p1 = scmp.lt.u32.totalorder %s2320_s29, %s2979_s1 }
   0x8   :  { %p2326_p2 = pnand %p2324_p1, %p2321_p0 }
   0xa   :  { %2329 = shalt.err (!%p2326_p2)
}
   0xb   :  { %s2330_s17 = scalar_lea.vmem %s43_s26, 32  ;;  %p2335_p4 = scmp.lt.s32.totalorder %s43_s26, %s43_s26 }
   0xc   :  { %p2331_p3 = scmp.ne.s32.totalorder %s43_s26, %s2330_s17  ;;  %p2336_p5 = scmp.lt.s32.totalorder %s2330_s17, %s2330_s17 }
   0xe   :  { %p2337_p6 = por %p2336_p5, %p2335_p4 }
  0x10   :  { %p2338_p7 = pnand %p2337_p6, %p2331_p3 }
  0x12   :  { %2341 = shalt.err (!%p2338_p7)
}
  0x13   :  { %45 = dma.hbm_to_vmem [thread:$0]  %s2979_s1, 32, %s43_s26, [#allocation7]  }
  0x14   :  { %s2507_s20 = smov [#allocation9]   ;;  %s2508_s22 = smov [#allocation12]  }
  0x15   :  { %s65_s21 = sshll.u32 %s2507_s20, 4  ;;  %s89_s23 = sshll.u32 %s2508_s22, 4  ;;  %s66_s21 = int_to_ptr.vmem [resolvable:$true] %s65_s21  ;;  %s90_s23 = int_to_ptr.vmem [resolvable:$true] %s89_s23 }
  0x16   :  { %s2342_s27 = scalar_lea.hbm %s2982_s4, 512 }
  0x17   :  { %p2343_p8 = scmp.ne.s32.totalorder %s2982_s4, %s2342_s27  ;;  %p2346_p9 = scmp.lt.u32.totalorder %s2342_s27, %s2982_s4 }
  0x19   :  { %p2348_p10 = pnand %p2346_p9, %p2343_p8 }
  0x1b   :  { %2351 = shalt.err (!%p2348_p10)
}
  0x1c   :  { %s2352_s1 = scalar_lea.vmem %s66_s21, 512  ;;  %p2357_p12 = scmp.lt.s32.totalorder %s66_s21, %s66_s21 }
  0x1d   :  { %p2353_p11 = scmp.ne.s32.totalorder %s66_s21, %s2352_s1  ;;  %p2358_p13 = scmp.lt.s32.totalorder %s2352_s1, %s2352_s1 }
  0x1f   :  { %p2359_p0 = por %p2358_p13, %p2357_p12 }
  0x21   :  { %p2360_p1 = pnand %p2359_p0, %p2353_p11 }
  0x23   :  { %2363 = shalt.err (!%p2360_p1)
}
  0x24   :  { %s2509_s26 = smov 128   ;;  %s2510_s15 = smov 8  }
  0x25   :  { %71 = dma.hbm_to_vmem [thread:$0]  %s2982_s4, 512, %s66_s21, [#allocation10], %s2509_s26, %s2509_s26, %s2510_s15  }
  0x26   :  { %s2364_s20 = scalar_lea.hbm %s2984_s6, 512 }
  0x27   :  { %p2365_p2 = scmp.ne.s32.totalorder %s2984_s6, %s2364_s20  ;;  %p2368_p3 = scmp.lt.u32.totalorder %s2364_s20, %s2984_s6 }
  0x29   :  { %p2370_p4 = pnand %p2368_p3, %p2365_p2 }
  0x2b   :  { %2373 = shalt.err (!%p2370_p4)
}
  0x2c   :  { %s2374_s28 = scalar_lea.vmem %s90_s23, 512  ;;  %p2379_p6 = scmp.lt.s32.totalorder %s90_s23, %s90_s23 }
  0x2d   :  { %p2375_p5 = scmp.ne.s32.totalorder %s90_s23, %s2374_s28  ;;  %p2380_p7 = scmp.lt.s32.totalorder %s2374_s28, %s2374_s28 }
  0x2f   :  { %p2381_p8 = por %p2380_p7, %p2379_p6 }
  0x31   :  { %p2382_p9 = pnand %p2381_p8, %p2375_p5 }
  0x33   :  { %2385 = shalt.err (!%p2382_p9)
}
  0x34   :  { %95 = dma.hbm_to_vmem [thread:$0]  %s2984_s6, 512, %s90_s23, [#allocation13], %s2509_s26, %s2509_s26, %s2510_s15  }
  0x35   :  { %s2511_s29 = smov [#allocation3]   ;;  %s2512_s14 = smov [#allocation8]  }
  0x36   :  { %s29_s30 = sshll.u32 %s2511_s29, 4  ;;  %s51_s1 = sshll.u32 %s2512_s14, 4  ;;  %s30_s30 = int_to_ptr.vmem [resolvable:$true] %s29_s30  ;;  %s52_s1 = int_to_ptr.vmem [resolvable:$true] %s51_s1 }
  0x37   :  { %s2386_s18 = scalar_lea.hbm %s2978_s0, 256 }
  0x38   :  { %p2387_p10 = scmp.ne.s32.totalorder %s2978_s0, %s2386_s18  ;;  %p2390_p11 = scmp.lt.u32.totalorder %s2386_s18, %s2978_s0 }
  0x3a   :  { %p2392_p12 = pnand %p2390_p11, %p2387_p10 }
  0x3c   :  { %2395 = shalt.err (!%p2392_p12)
}
  0x3d   :  { %s2396_s6 = scalar_lea.vmem %s30_s30, 256  ;;  %p2401_p0 = scmp.lt.s32.totalorder %s30_s30, %s30_s30 }
  0x3e   :  { %p2397_p13 = scmp.ne.s32.totalorder %s30_s30, %s2396_s6  ;;  %p2402_p1 = scmp.lt.s32.totalorder %s2396_s6, %s2396_s6 }
  0x40   :  { %p2403_p2 = por %p2402_p1, %p2401_p0 }
  0x42   :  { %p2404_p3 = pnand %p2403_p2, %p2397_p13 }
  0x44   :  { %2407 = shalt.err (!%p2404_p3)
}
  0x45   :  { %35 = dma.hbm_to_vmem [thread:$0]  %s2978_s0, 256, %s30_s30, [#allocation4], %s2509_s26, %s2509_s26, %s2510_s15  }
  0x46   :  { %s2408_s4 = scalar_lea.hbm %s2980_s2, 256 }
  0x47   :  { %p2409_p4 = scmp.ne.s32.totalorder %s2980_s2, %s2408_s4  ;;  %p2412_p5 = scmp.lt.u32.totalorder %s2408_s4, %s2980_s2 }
  0x49   :  { %p2414_p6 = pnand %p2412_p5, %p2409_p4 }
  0x4b   :  { %2417 = shalt.err (!%p2414_p6)
}
  0x4c   :  { %s2418_s17 = scalar_lea.vmem %s52_s1, 256  ;;  %p2423_p8 = scmp.lt.s32.totalorder %s52_s1, %s52_s1 }
  0x4d   :  { %p2419_p7 = scmp.ne.s32.totalorder %s52_s1, %s2418_s17  ;;  %p2424_p9 = scmp.lt.s32.totalorder %s2418_s17, %s2418_s17 }
  0x4f   :  { %p2425_p10 = por %p2424_p9, %p2423_p8 }
  0x51   :  { %p2426_p11 = pnand %p2425_p10, %p2419_p7 }
  0x53   :  { %2429 = shalt.err (!%p2426_p11)
}
  0x54   :  { %57 = dma.hbm_to_vmem [thread:$0]  %s2980_s2, 256, %s52_s1, [#allocation7], %s2509_s26, %s2509_s26, %s2510_s15  }
  0x55   :  { %s2513_s18 = smov [#allocation11]   ;;  %s2514_s20 = smov [#allocation14]  }
  0x56   :  { %s77_s19 = sshll.u32 %s2513_s18, 4  ;;  %s101_s22 = sshll.u32 %s2514_s20, 4  ;;  %s78_s19 = int_to_ptr.vmem [resolvable:$true] %s77_s19  ;;  %s102_s22 = int_to_ptr.vmem [resolvable:$true] %s101_s22 }
  0x57   :  { %s2430_s23 = scalar_lea.hbm %s2983_s5, 256 }
  0x58   :  { %p2431_p12 = scmp.ne.s32.totalorder %s2983_s5, %s2430_s23  ;;  %p2434_p13 = scmp.lt.u32.totalorder %s2430_s23, %s2983_s5 }
  0x5a   :  { %p2436_p0 = pnand %p2434_p13, %p2431_p12 }
  0x5c   :  { %2439 = shalt.err (!%p2436_p0)
}
  0x5d   :  { %s2440_s2 = scalar_lea.vmem %s78_s19, 256  ;;  %p2445_p2 = scmp.lt.s32.totalorder %s78_s19, %s78_s19 }
  0x5e   :  { %p2441_p1 = scmp.ne.s32.totalorder %s78_s19, %s2440_s2  ;;  %p2446_p3 = scmp.lt.s32.totalorder %s2440_s2, %s2440_s2 }
  0x60   :  { %p2447_p4 = por %p2446_p3, %p2445_p2 }
  0x62   :  { %p2448_p5 = pnand %p2447_p4, %p2441_p1 }
  0x64   :  { %2451 = shalt.err (!%p2448_p5)
}
  0x65   :  { %83 = dma.hbm_to_vmem [thread:$0]  %s2983_s5, 256, %s78_s19, [#allocation10], %s2509_s26, %s2509_s26, %s2510_s15  }
  0x66   :  { %s2452_s16 = scalar_lea.hbm %s2985_s7, 512 }
  0x67   :  { %p2453_p6 = scmp.ne.s32.totalorder %s2985_s7, %s2452_s16  ;;  %p2456_p7 = scmp.lt.u32.totalorder %s2452_s16, %s2985_s7 }
  0x69   :  { %p2458_p8 = pnand %p2456_p7, %p2453_p6 }
  0x6b   :  { %2461 = shalt.err (!%p2458_p8)
}
  0x6c   :  { %s2462_s20 = scalar_lea.vmem %s102_s22, 512  ;;  %p2467_p10 = scmp.lt.s32.totalorder %s102_s22, %s102_s22 }
  0x6d   :  { %p2463_p9 = scmp.ne.s32.totalorder %s102_s22, %s2462_s20  ;;  %p2468_p11 = scmp.lt.s32.totalorder %s2462_s20, %s2462_s20 }
  0x6f   :  { %p2469_p12 = por %p2468_p11, %p2467_p10 }
  0x71   :  { %p2470_p13 = pnand %p2469_p12, %p2463_p9 }
  0x73   :  { %2473 = shalt.err (!%p2470_p13)
}
  0x74   :  { %107 = dma.hbm_to_vmem [thread:$0]  %s2985_s7, 512, %s102_s22, [#allocation13], %s2509_s26, %s2509_s26, %s2510_s15  }
  0x75   :  { %2496 = dma.done.wait [#allocation4], 256  }
  0x76   :  { %2497 = vsyncadd [#allocation4], 4294967040 }
  0x77   :  { %2498 = dma.done.wait [#allocation7], 288  }
  0x78   :  { %2499 = vsyncadd [#allocation7], 4294967008 }
  0x79   :  { %2500 = dma.done.wait [#allocation10], 768  }
  0x7a   :  { %2501 = vsyncadd [#allocation10], 4294966528 }
  0x7b   :  { %2502 = dma.done.wait [#allocation13], 1024  }
  0x7c   :  { %2503 = vsyncadd [#allocation13], 4294966272  ;;  %vm160_vm0 = vcmask 1043456   ;;  %vm153_vm1 = vcmask 97280   ;;  %vm2515_vm2 = vmmov 1   ;;  %v145_v0 = vld [vmem:[#allocation8] sm:$0xff] }
  0x7d   :  { %vm2154_vm3 = vmpackc.low %vm160_vm0, %vm2515_vm2  ;;  %v146_v1 = vld [vmem:[#allocation8 + $0x8] sm:$0xf]  ;;  %v143_v2 = vld [vmem:[#allocation3] sm:$0xff]  ;;  %v2516_v8 = vmov 0.0|0.0   ;;  %vm2517_vm4 = vmmov 0   ;;  %v2518_v12 = vmov 0.0  }
  0x7e   :  { %v2153_v3 = vpack.c.bf16 %v146_v1, %v145_v0  ;;  %1978 = vmatprep.mubr.msk.f32.mxu1 %vm153_vm1, %v143_v2  ;;  %v144_v4 = vld [vmem:[#allocation3 + $0x8] sm:$0xff]  ;;  %v273_v5 = vld [vmem:[%s2981_s3] sm:$0xff]  ;;  %v274_v6 = vld [vmem:[%s2981_s3 + $0x8] sm:$0xff]  ;;  %2165 = vmatprep.subr.bf16.mxu0 %v2516_v8  ;;  %vm283_vm7 = vcmask 261120   ;;  %vm446_vm9 = vcmask 254976   ;;  %s2519_s21 = smov 112  }
  0x7f   :  { %v2160_v7 = vpack.c.bf16 %v274_v6, %v273_v5  ;;  %v275_v9 = vld [vmem:[%s2981_s3 + $0x10] sm:$0xff]  ;;  %v276_v10 = vld [vmem:[%s2981_s3 + $0x18] sm:$0xff]  ;;  %2000 = vmatprep.mubr.msk.f32.mxu0 %vm2517_vm4, %v2518_v12  ;;  %v1857_v13 = vld [vmem:[%s2988_s10] ss:$0 sm:$0xff]  ;;  %vm466_vm10 = vcmask 130048   ;;  %s2520_s16 = smov 64  }
  0x80   :  { %2155 = vmatprep.subr.msk.bf16.mxu1 %vm2154_vm3, %v2153_v3  ;;  %v2163_v11 = vpack.c.bf16 %v276_v10, %v275_v9  ;;  %v363_v42 = vld [vmem:[#allocation9] sm:$0xff]  ;;  %v364_v43 = vld [vmem:[#allocation9 + $0x8] sm:$0xff]  ;;  %v365_v44 = vld [vmem:[#allocation9 + $0x10] sm:$0xff]  ;;  %s2521_s17 = smov 96   ;;  %vm898_vm15 = vcmask 1041408   ;;  %s2522_s25 = smov 32  }
  0x81   :  { %2158 = vmatpush3.bf16.msk.msra.mxu1 %vm2154_vm3, %v2153_v3  ;;  %v2166_v45 = vpack.c.bf16 %v364_v43, %v363_v42  ;;  %v366_v46 = vld [vmem:[#allocation9 + $0x18] sm:$0xff]  ;;  %v1863_v48 = vld [vmem:[%s2988_s10 + $0x1] ss:$0 sm:$0xff]  ;;  %v1866_v57 = vld [vmem:[%s2988_s10 + $0x2] ss:$0 sm:$0xff]  ;;  %s2523_s30 = smov [#allocation15]  }
  0x82   :  { %2159 = vmatprep.subr.bf16.mxu1 %v2516_v8  ;;  %v2169_v47 = vpack.c.bf16 %v366_v46, %v365_v44  ;;  %v458_v62 = vld [vmem:[#allocation11] sm:$0xff]  ;;  %v459_v63 = vld [vmem:[#allocation11 + $0x8] sm:$0xff]  ;;  %v547_v9 = vld [vmem:[#allocation12 + $0x8] sm:$0xff]  ;;  %s1839_s18 = sshll.u32 %s2523_s30, 4  ;;  %s1840_s18 = int_to_ptr.vmem [resolvable:$true] %s1839_s18 }
  0x83   :  { %2167 = vmatpush3.bf16.msra.mxu0 %v2166_v45  ;;  %v2172_v0 = vpack.c.bf16 %v459_v63, %v458_v62  ;;  %v448_v3 = vld [vmem:[#allocation6] sm:$0x3]  ;;  %s2474_s20 = scalar_lea.vmem %s1840_s18, 32  ;;  %p2479_p1 = scmp.lt.s32.totalorder %s1840_s18, %s1840_s18 }
  0x84   :  { %1979 = vmatmul.mubr.msk.f32.vlgmr.msra.gmra.mrb[0].mxu1 %vm153_vm1, %v144_v4  ;;  %2168 = vmatprep.subr.bf16.mxu0 %v2516_v8  ;;  %v917_v46 = vld [vmem:[%s2986_s8] sm:$0xff]  ;;  %vm901_vm1 = vcmask 1045504   ;;  %p2475_p0 = scmp.ne.s32.totalorder %s1840_s18, %s2474_s20  ;;  %p2480_p2 = scmp.lt.s32.totalorder %s2474_s20, %s2474_s20 }
  0x85   :  { %2161 = vmatpush3.bf16.msra.mxu1 %v2160_v7  ;;  %1989 = vmatprep.mubr.msk.f32.mxu1 %vm2517_vm4, %v2518_v12  ;;  %v546_v7 = vld [vmem:[#allocation12] sm:$0xff] }
  0x86   :  { %2162 = vmatprep.subr.bf16.mxu1 %v2516_v8  ;;  %v2175_v10 = vpack.c.bf16 %v547_v9, %v546_v7  ;;  %p2481_p3 = por %p2480_p2, %p2479_p1 }
  0x87   :  { %2170 = vmatpush3.bf16.msra.mxu0 %v2169_v47  ;;  %v918_v47 = vld [vmem:[%s2986_s8 + $0x8] sm:$0xff] }
  0x88   :  { %2174 = vmatprep.subr.bf16.mxu0 %v2516_v8  ;;  %p2482_p4 = pnand %p2481_p3, %p2475_p0 }
  0x89   :  { %2164 = vmatpush3.bf16.msra.mxu1 %v2163_v11  ;;  %v548_v11 = vld [vmem:[#allocation12 + $0x10] sm:$0xff] }
  0x8a   :  { %2171 = vmatprep.subr.bf16.mxu1 %v2516_v8 }
 0x157   :  { %v1980_v14 = vpop.f32.mrb[0].mxu1 }
 0x158   :  { %v236_v15 = vadd.f32 %v1980_v14, %v1857_v13  ;;  %v230_v16 = vpop.f32.mrb[1].mxu1 }
 0x159   :  { %v231_v17 = vadd.f32 %v1857_v13, %v230_v16  ;;  %v549_v13 = vld [vmem:[#allocation12 + $0x18] sm:$0xff] }
 0x15a   :  { %v242_v18 = vmin.f32 %v236_v15, 0.0  ;;  %vm240_vm6 = vcmp.gt.f32.partialorder %v236_v15, 0.0  ;;  %v2178_v14 = vpack.c.bf16 %v549_v13, %v548_v11 }
 0x15b   :  { %v241_v19 = vmin.f32 %v231_v17, 0.0  ;;  %vm239_vm5 = vcmp.gt.f32.partialorder %v231_v17, 0.0 }
 0x15c   :  { %v245_v20 = vmul.f32 1.442695, %v242_v18 }
 0x15d   :  { %v243_v21 = vmul.f32 1.442695, %v241_v19 }
 0x15f   :  { %2272 = vpow2.f32 %v243_v21 }
 0x160   :  { %2274 = vpow2.f32 %v245_v20 }
 0x169   :  { %v2273_v22 = vpop.eup %2272 }
 0x16a   :  { %v1861_v23 = vadd.f32 -1.0, %v2273_v22  ;;  %v2275_v24 = vpop.eup %2274 }
 0x16b   :  { %v1862_v27 = vadd.f32 -1.0, %v2275_v24  ;;  %v659_v24 = vld [vmem:[#allocation14] sm:$0xff] }
 0x16c   :  { %v249_v25 = vsel %vm239_vm5, %v231_v17, %v1861_v23 }
 0x16d   :  { %v252_v26 = vrot.slane %v249_v25, 2  ;;  %v255_v29 = vrot.slane %v249_v25, 4  ;;  %v258_v31 = vrot.slane %v249_v25, 6  ;;  %v250_v32 = vsel %vm240_vm6, %v236_v15, %v1862_v27  ;;  %v1868_v15 = vld [vmem:[%s2988_s10 + $0x3] ss:$0 sm:$0xff] }
 0x16e   :  { %v263_v34 = vrot.slane %v250_v32, 2  ;;  %v266_v36 = vrot.slane %v250_v32, 4  ;;  %v269_v38 = vrot.slane %v250_v32, 6 }
 0x16f   :  { %v254_v28 = vadd.f32 %v252_v26, %v249_v25  ;;  %v660_v25 = vld [vmem:[#allocation14 + $0x8] sm:$0xff]  ;;  %v661_v26 = vld [vmem:[#allocation14 + $0x10] sm:$0xff] }
 0x170   :  { %v2181_v27 = vpack.c.bf16 %v660_v25, %v659_v24 }
 0x171   :  { %v257_v30 = vadd.f32 %v255_v29, %v254_v28  ;;  %v662_v28 = vld [vmem:[#allocation14 + $0x18] sm:$0xff] }
 0x172   :  { %v2184_v29 = vpack.c.bf16 %v662_v28, %v661_v26 }
 0x173   :  { %v260_v33 = vadd.f32 %v258_v31, %v257_v30 }
 0x175   :  { %v261_v35 = vadd.f32 %v260_v33, %v250_v32  ;;  %v1872_v32 = vld [vmem:[%s2988_s10 + $0x4] ss:$0 sm:$0xff] }
 0x177   :  { %v265_v37 = vadd.f32 %v263_v34, %v261_v35 }
 0x179   :  { %v268_v39 = vadd.f32 %v266_v36, %v265_v37 }
 0x17b   :  { %v271_v40 = vadd.f32 %v269_v38, %v268_v39 }
 0x17d   :  { %v272_v41 = vmul.f32 0.125, %v271_v40 }
 0x17f   :  { %1990 = vmatmul.mubr.msk.f32.vlgmr.msra.gmra.mrb[2].mxu1 %vm283_vm7, %v272_v41 }
 0x180   :  { %2007 = vmatprep.mubr.msk.f32.mxu1 %vm2517_vm4, %v2518_v12  ;;  %2173 = vmatpush3.bf16.msra.mxu1 %v2172_v0 }
 0x181   :  { %2180 = vmatprep.subr.bf16.mxu1 %v2516_v8 }
 0x252   :  { %v353_v49 = vpop.f32.mrb[2].mxu1 }
 0x253   :  { %v354_v50 = vadd.f32 %v1863_v48, %v353_v49  ;;  %v1991_v51 = vpop.f32.mrb[3].mxu1 }
 0x255   :  { %v358_v52 = vmin.f32 %v354_v50, 0.0  ;;  %vm357_vm8 = vcmp.gt.f32.partialorder %v354_v50, 0.0 }
 0x257   :  { %v359_v53 = vmul.f32 1.442695, %v358_v52  ;;  %v2761_v52 = vpack.c.bf16 %v918_v47, %v917_v46 }
 0x259   :  { %2276 = vpow2.f32 %v359_v53 }
 0x263   :  { %v2277_v54 = vpop.eup %2276 }
 0x264   :  { %v1865_v55 = vadd.f32 -1.0, %v2277_v54  ;;  %v919_v54 = vld [vmem:[%s2986_s8 + $0x10] sm:$0xff] }
 0x266   :  { %v362_v56 = vsel %vm357_vm8, %v354_v50, %v1865_v55  ;;  %v920_v55 = vld [vmem:[%s2986_s8 + $0x18] sm:$0xff] }
 0x267   :  { %2001 = vmatmul.mubr.msk.f32.vlgmr.msra.gmra.mrb[0].mxu0 %vm283_vm7, %v362_v56 }
 0x268   :  { %2018 = vmatprep.mubr.msk.f32.mxu0 %vm2517_vm4, %v2518_v12  ;;  %2176 = vmatpush3.bf16.msra.mxu0 %v2175_v10 }
 0x269   :  { %2177 = vmatprep.subr.bf16.mxu0 %v2516_v8 }
 0x26c   :  { %2179 = vmatpush3.bf16.msra.mxu0 %v2178_v14 }
 0x26d   :  { %2186 = vmatprep.subr.bf16.mxu0 %v2516_v8 }
 0x33a   :  { %v442_v58 = vpop.f32.mrb[0].mxu0 }
 0x33b   :  { %v443_v59 = vadd.f32 %v1866_v57, %v442_v58  ;;  %v2002_v60 = vpop.f32.mrb[1].mxu0  ;;  %v2773_v58 = vpack.c.bf16 %v920_v55, %v919_v54 }
 0x33d   :  { %v449_v61 = vmul.f32 0.5, %v443_v59  ;;  %447 = vst.msk [vmem:[#allocation15] sm:$0x3] %vm446_vm9, %v443_v59 }
 0x33f   :  { %v450_v1 = vmul.f32 1.442695, %v449_v61  ;;  %v1876_v61 = vld [vmem:[%s2988_s10 + $0x5] ss:$0 sm:$0xff] }
 0x341   :  { %2278 = vpow2.f32 %v450_v1 }
 0x34b   :  { %v2279_v2 = vpop.eup %2278 }
 0x34c   :  { %453 = vrot.lane.b32.xlu0 %v2279_v2, %s2519_s21 }
 0x3be   :  { %v454_v4 = vpop.permute.xlu0 %453 }
 0x3bf   :  { %v456_v5 = vmul.f32 %v454_v4, %v448_v3 }
 0x3c1   :  { %v457_v6 = vadd.f32 %v456_v5, %v443_v59 }
 0x3c3   :  { %2008 = vmatmul.mubr.msk.f32.vlgmr.msra.gmra.mrb[4].mxu1 %vm466_vm10, %v457_v6  ;;  %v2811_v6 = vld [vmem:[%s2988_s10 + $0x6] ss:$0 sm:$0xff] }
 0x3c4   :  { %2029 = vmatprep.mubr.msk.f32.mxu1 %vm2517_vm4, %v2518_v12  ;;  %2182 = vmatpush3.bf16.msra.mxu1 %v2181_v27 }
 0x3c5   :  { %2183 = vmatprep.subr.bf16.mxu1 %v2516_v8 }
 0x3c8   :  { %2185 = vmatpush3.bf16.msra.mxu1 %v2184_v29 }
 0x3c9   :  { %2192 = vmatprep.subr.bf16.mxu1 %v2516_v8 }
 0x496   :  { %v536_v16 = vpop.f32.mrb[4].mxu1 }
 0x497   :  { %v537_v17 = vadd.f32 %v1868_v15, %v536_v16  ;;  %v2009_v18 = vpop.f32.mrb[5].mxu1 }
 0x499   :  { %v541_v19 = vmin.f32 %v537_v17, 0.0  ;;  %vm540_vm11 = vcmp.gt.f32.partialorder %v537_v17, 0.0 }
 0x49b   :  { %v542_v20 = vmul.f32 1.442695, %v541_v19 }
 0x49d   :  { %2280 = vpow2.f32 %v542_v20 }
 0x4a7   :  { %v2281_v21 = vpop.eup %2280 }
 0x4a8   :  { %v1870_v22 = vadd.f32 -1.0, %v2281_v21 }
 0x4aa   :  { %v545_v23 = vsel %vm540_vm11, %v537_v17, %v1870_v22 }
 0x4ab   :  { %2019 = vmatmul.mubr.msk.f32.vlgmr.msra.gmra.mrb[2].mxu0 %vm283_vm7, %v545_v23 }
 0x4ac   :  { %2040 = vmatprep.mubr.msk.f32.mxu0 %vm2517_vm4, %v2518_v12  ;;  %2188 = vmatpush3.bf16.msra.mxu0 %v2181_v27 }
 0x4ad   :  { %2189 = vmatprep.subr.bf16.mxu0 %v2516_v8 }
 0x4b0   :  { %2191 = vmatpush3.bf16.msra.mxu0 %v2184_v29 }
 0x4b1   :  { %2198 = vmatprep.subr.bf16.mxu0 %v2516_v8 }
 0x57e   :  { %v619_v30 = vpop.f32.mrb[2].mxu0 }
 0x57f   :  { %634 = vrot.lane.b32.xlu1 %v619_v30, %s2520_s16  ;;  %630 = vrot.lane.b32.xlu0 %v619_v30, %s2521_s17  ;;  %v2020_v31 = vpop.f32.mrb[3].mxu0  ;;  %v644_v33 = vadd.f32 %v1872_v32, %v619_v30 }
 0x5f1   :  { %v631_v34 = vpop.permute.xlu0 %630  ;;  %v635_v37 = vpop.permute.xlu1 %634 }
 0x5f2   :  { %v633_v35 = vadd.f32 %v1872_v32, %v631_v34  ;;  %v645_v36 = vadd.f32 %v644_v33, %v631_v34 }
 0x5f4   :  { %v637_v38 = vadd.f32 %v635_v37, %v633_v35  ;;  %v646_v39 = vadd.f32 %v645_v36, %v635_v37  ;;  %v654_v41 = vmin.f32 %v645_v36, 0.0  ;;  %vm653_vm14 = vcmp.gt.f32.partialorder %v645_v36, 0.0 }
 0x5f6   :  { %v639_v40 = vmin.f32 %v637_v38, 0.0  ;;  %v648_v42 = vmin.f32 %v646_v39, 0.0  ;;  %v655_v45 = vmul.f32 1.442695, %v654_v41  ;;  %vm638_vm12 = vcmp.gt.f32.partialorder %v637_v38, 0.0 }
 0x5f7   :  { %vm647_vm13 = vcmp.gt.f32.partialorder %v646_v39, 0.0 }
 0x5f8   :  { %v640_v43 = vmul.f32 1.442695, %v639_v40  ;;  %v649_v44 = vmul.f32 1.442695, %v648_v42 }
 0x5fa   :  { %2282 = vpow2.f32 %v640_v43 }
 0x5fb   :  { %2284 = vpow2.f32 %v649_v44 }
 0x5fc   :  { %2286 = vpow2.f32 %v655_v45 }
 0x604   :  { %v2283_v48 = vpop.eup %2282 }
 0x605   :  { %v2285_v49 = vpop.eup %2284  ;;  %v1873_v50 = vadd.f32 -1.0, %v2283_v48 }
 0x606   :  { %v1874_v51 = vadd.f32 -1.0, %v2285_v49  ;;  %v2287_v56 = vpop.eup %2286 }
 0x607   :  { %v643_v53 = vsel %vm638_vm12, %v637_v38, %v1873_v50  ;;  %v1875_v59 = vadd.f32 -1.0, %v2287_v56 }
 0x608   :  { %2030 = vmatmul.mubr.msk.f32.vlgmr.msra.gmra.mrb[6].mxu1 %vm283_vm7, %v643_v53  ;;  %v652_v57 = vsel %vm647_vm13, %v646_v39, %v1874_v51 }
 0x609   :  { %2041 = vmatmul.mubr.msk.f32.vlgmr.msra.gmra.mrb[4].mxu0 %vm283_vm7, %v652_v57  ;;  %2194 = vmatpush3.bf16.msra.mxu1 %v2181_v27  ;;  %v658_v60 = vsel %vm653_vm14, %v645_v36, %v1875_v59 }
 0x60a   :  { %2200 = vmatpush3.bf16.msra.mxu0 %v2761_v52  ;;  %2195 = vmatprep.subr.bf16.mxu1 %v2516_v8 }
 0x60b   :  { %2201 = vmatprep.subr.bf16.mxu0 %v2516_v8  ;;  %2051 = vmatprep.mubr.msk.f32.mxu1 %vm2517_vm4, %v2518_v12 }
 0x60c   :  { %2062 = vmatprep.mubr.msk.f32.mxu0 %vm2517_vm4, %v2518_v12 }
 0x60d   :  { %2197 = vmatpush3.bf16.msra.mxu1 %v2184_v29 }
 0x60e   :  { %2203 = vmatpush3.bf16.msra.mxu0 %v2773_v58  ;;  %2204 = vmatprep.subr.bf16.mxu1 %v2516_v8 }
 0x60f   :  { %2210 = vmatprep.subr.bf16.mxu0 %v2516_v8 }
 0x610   :  { %2052 = vmatmul.mubr.msk.f32.vlgmr.msra.gmra.mrb[8].mxu1 %vm283_vm7, %v658_v60 }
 0x611   :  { %2063 = vmatmul.mubr.f32.vlgmr.msra.gmra.mrb[6].mxu0 %v2518_v12  ;;  %2206 = vmatpush3.bf16.msra.mxu1 %v2761_v52 }
 0x612   :  { %2207 = vmatprep.subr.bf16.mxu1 %v2516_v8  ;;  %2073 = vmatprep.mubr.msk.f32.mxu1 %vm2517_vm4, %v2518_v12 }
 0x613   :  { %2212 = vmatpush3.bf16.msra.mxu0 %v2761_v52  ;;  %2084 = vmatprep.mubr.msk.f32.mxu0 %vm2517_vm4, %v2518_v12 }
 0x614   :  { %2213 = vmatprep.subr.bf16.mxu0 %v2516_v8 }
 0x615   :  { %2209 = vmatpush3.bf16.msra.mxu1 %v2773_v58 }
 0x616   :  { %2216 = vmatprep.subr.bf16.mxu1 %v2516_v8 }
 0x617   :  { %2215 = vmatpush3.bf16.msra.mxu0 %v2773_v58 }
 0x618   :  { %2222 = vmatprep.subr.bf16.mxu0 %v2516_v8 }
 0x6db   :  { %v738_v62 = vpop.f32.mrb[6].mxu1 }
 0x6dc   :  { %v811_v63 = vpop.f32.mrb[4].mxu0  ;;  %v2031_v0 = vpop.f32.mrb[7].mxu1  ;;  %v2824_v18 = vadd.f32 %v1876_v61, %v738_v62 }
 0x6dd   :  { %v2800_v1 = vadd.f32 %v1876_v61, %v811_v63  ;;  %v2042_v2 = vpop.f32.mrb[5].mxu0 }
 0x6df   :  { %v889_v3 = vrot.slane %v2800_v1, 6  ;;  %v891_v4 = vrot.slane %v2800_v1, 4 }
 0x6e1   :  { %v903_v5 = vsel %vm898_vm15, %v2800_v1, %v889_v3 }
 0x6e2   :  { %v904_v7 = vsel %vm160_vm0, %v903_v5, %v891_v4 }
 0x6e3   :  { %v884_v9 = vpop.f32.mrb[8].mxu1 }
 0x6e4   :  { %v2816_v10 = vadd.f32 %v1876_v61, %v884_v9  ;;  %v996_v11 = vpop.f32.mrb[6].mxu0  ;;  %v2053_v13 = vpop.f32.mrb[9].mxu1 }
 0x6e5   :  { %v997_v14 = vadd.f32 %v2811_v6, %v996_v11  ;;  %v2064_v15 = vpop.f32.mrb[7].mxu0 }
 0x6e6   :  { %v896_v16 = vrot.slane %v2816_v10, 2 }
 0x6e7   :  { %1006 = vrot.lane.b32.xlu1 %v997_v14, %s2520_s16  ;;  %v1000_v19 = vadd.f32 %v997_v14, %v2824_v18 }
 0x6e8   :  { %v2822_v17 = vsel %vm901_vm1, %v904_v7, %v896_v16 }
 0x6e9   :  { %v1001_v20 = vmul.f32 0.5, %v1000_v19 }
 0x6eb   :  { %2288 = vtanh.f32 %v1001_v20 }
 0x6f5   :  { %v2289_v21 = vpop.eup %2288 }
 0x6f6   :  { %v1003_v22 = vadd.f32 1.0, %v2289_v21 }
 0x6f8   :  { %v1004_v23 = vmul.f32 0.5, %v1003_v22 }
 0x6fa   :  { %v1016_v29 = vsub.f32 1.0, %v1004_v23  ;;  %v1022_v31 = vmul.f32 0.0, %v1004_v23 }
 0x759   :  { %v1007_v24 = vpop.permute.xlu1 %1006 }
 0x75a   :  { %v1009_v25 = vmul.f32 %v1007_v24, %v1004_v23 }
 0x75c   :  { %1011 = vrot.lane.b32.xlu0 %v1009_v25, %s2520_s16 }
 0x7ce   :  { %v1012_v26 = vpop.permute.xlu0 %1011 }
 0x7cf   :  { %v1014_v27 = vadd.f32 %v1012_v26, %v2824_v18 }
 0x7d1   :  { %2290 = vtanh.f32 %v1014_v27 }
 0x7db   :  { %v2291_v28 = vpop.eup %2290 }
 0x7dc   :  { %1018 = vrot.lane.b32.xlu1 %v2291_v28, %s2521_s17 }
 0x84e   :  { %v1019_v30 = vpop.permute.xlu1 %1018 }
 0x84f   :  { %v1021_v32 = vmul.f32 %v1019_v30, %v1016_v29 }
 0x851   :  { %v1023_v33 = vadd.f32 %v1022_v31, %v1021_v32 }
 0x853   :  { %1025 = vrot.lane.b32.xlu0 %v1023_v33, %s2521_s17 }
 0x8c5   :  { %v1026_v34 = vpop.permute.xlu0 %1025 }
 0x8c6   :  { %1028 = vst.msk [vmem:[#allocation2] sm:$0x3] %vm446_vm9, %v1026_v34  ;;  %2074 = vmatmul.mubr.msk.f32.vlgmr.msra.gmra.mrb[10].mxu1 %vm283_vm7, %v1026_v34 }
 0x8c7   :  { %2218 = vmatpush3.bf16.msra.mxu1 %v2761_v52  ;;  %2095 = vmatprep.mubr.msk.f32.mxu1 %vm2517_vm4, %v2518_v12 }
 0x8c8   :  { %2219 = vmatprep.subr.bf16.mxu1 %v2516_v8 }
 0x8cb   :  { %2221 = vmatpush3.bf16.msra.mxu1 %v2773_v58 }
 0x8cc   :  { %2228 = vmatprep.subr.bf16.mxu1 %v2516_v8 }
 0x999   :  { %v1097_v35 = vpop.f32.mrb[10].mxu1 }
 0x99a   :  { %v1098_v36 = vadd.f32 %v2811_v6, %v1097_v35  ;;  %v2075_v37 = vpop.f32.mrb[11].mxu1 }
 0x99c   :  { %1107 = vrot.lane.b32.xlu1 %v1098_v36, %s2520_s16  ;;  %v1101_v38 = vadd.f32 %v1098_v36, %v2800_v1 }
 0x99e   :  { %v1102_v39 = vmul.f32 0.5, %v1101_v38 }
 0x9a0   :  { %2292 = vtanh.f32 %v1102_v39 }
 0x9aa   :  { %v2293_v40 = vpop.eup %2292 }
 0x9ab   :  { %v1104_v41 = vadd.f32 1.0, %v2293_v40 }
 0x9ad   :  { %v1105_v42 = vmul.f32 0.5, %v1104_v41 }
 0x9af   :  { %v1117_v48 = vsub.f32 1.0, %v1105_v42  ;;  %v1123_v50 = vmul.f32 %v1105_v42, %v1023_v33 }
 0xa0e   :  { %v1108_v43 = vpop.permute.xlu1 %1107 }
 0xa0f   :  { %v1110_v44 = vmul.f32 %v1108_v43, %v1105_v42 }
 0xa11   :  { %1112 = vrot.lane.b32.xlu0 %v1110_v44, %s2520_s16 }
 0xa83   :  { %v1113_v45 = vpop.permute.xlu0 %1112 }
 0xa84   :  { %v1115_v46 = vadd.f32 %v1113_v45, %v2800_v1 }
 0xa86   :  { %2294 = vtanh.f32 %v1115_v46 }
 0xa90   :  { %v2295_v47 = vpop.eup %2294 }
 0xa91   :  { %1119 = vrot.lane.b32.xlu1 %v2295_v47, %s2521_s17 }
 0xb03   :  { %v1120_v49 = vpop.permute.xlu1 %1119 }
 0xb04   :  { %v1122_v51 = vmul.f32 %v1120_v49, %v1117_v48 }
 0xb06   :  { %v1124_v53 = vadd.f32 %v1123_v50, %v1122_v51 }
 0xb08   :  { %1126 = vrot.lane.b32.xlu0 %v1124_v53, %s2521_s17 }
 0xb7a   :  { %v1127_v54 = vpop.permute.xlu0 %1126 }
 0xb7b   :  { %1129 = vst.msk [vmem:[#allocation2 + $0x2] sm:$0x3] %vm446_vm9, %v1127_v54  ;;  %2085 = vmatmul.mubr.msk.f32.vlgmr.msra.gmra.mrb[8].mxu0 %vm283_vm7, %v1127_v54 }
 0xb7c   :  { %2224 = vmatpush3.bf16.msra.mxu0 %v2761_v52  ;;  %2106 = vmatprep.mubr.msk.f32.mxu0 %vm2517_vm4, %v2518_v12 }
 0xb7d   :  { %2225 = vmatprep.subr.bf16.mxu0 %v2516_v8 }
 0xb80   :  { %2227 = vmatpush3.bf16.msra.mxu0 %v2773_v58 }
 0xb81   :  { %2234 = vmatprep.subr.bf16.mxu0 %v2516_v8 }
 0xc4e   :  { %v1198_v55 = vpop.f32.mrb[8].mxu0 }
 0xc4f   :  { %v1199_v56 = vadd.f32 %v2811_v6, %v1198_v55  ;;  %v2086_v57 = vpop.f32.mrb[9].mxu0 }
 0xc51   :  { %1208 = vrot.lane.b32.xlu1 %v1199_v56, %s2520_s16  ;;  %v1202_v59 = vadd.f32 %v1199_v56, %v2800_v1 }
 0xc53   :  { %v1203_v60 = vmul.f32 0.5, %v1202_v59 }
 0xc55   :  { %2296 = vtanh.f32 %v1203_v60 }
 0xc5f   :  { %v2297_v61 = vpop.eup %2296 }
 0xc60   :  { %v1205_v62 = vadd.f32 1.0, %v2297_v61 }
 0xc62   :  { %v1206_v63 = vmul.f32 0.5, %v1205_v62 }
 0xc64   :  { %v1218_v11 = vsub.f32 1.0, %v1206_v63  ;;  %v1224_v14 = vmul.f32 %v1206_v63, %v1124_v53 }
 0xcc3   :  { %v1209_v0 = vpop.permute.xlu1 %1208 }
 0xcc4   :  { %v1211_v2 = vmul.f32 %v1209_v0, %v1206_v63 }
 0xcc6   :  { %1213 = vrot.lane.b32.xlu0 %v1211_v2, %s2520_s16 }
 0xd38   :  { %v1214_v5 = vpop.permute.xlu0 %1213 }
 0xd39   :  { %v1216_v7 = vadd.f32 %v1214_v5, %v2800_v1 }
 0xd3b   :  { %2298 = vtanh.f32 %v1216_v7 }
 0xd45   :  { %v2299_v9 = vpop.eup %2298 }
 0xd46   :  { %1220 = vrot.lane.b32.xlu1 %v2299_v9, %s2521_s17 }
 0xdb8   :  { %v1221_v13 = vpop.permute.xlu1 %1220 }
 0xdb9   :  { %v1223_v15 = vmul.f32 %v1221_v13, %v1218_v11 }
 0xdbb   :  { %v1225_v16 = vadd.f32 %v1224_v14, %v1223_v15 }
 0xdbd   :  { %1227 = vrot.lane.b32.xlu0 %v1225_v16, %s2521_s17 }
 0xe2f   :  { %v1228_v19 = vpop.permute.xlu0 %1227 }
 0xe30   :  { %1230 = vst.msk [vmem:[#allocation2 + $0x4] sm:$0x3] %vm446_vm9, %v1228_v19  ;;  %2096 = vmatmul.mubr.msk.f32.vlgmr.msra.gmra.mrb[12].mxu1 %vm283_vm7, %v1228_v19 }
 0xe31   :  { %2230 = vmatpush3.bf16.msra.mxu1 %v2761_v52  ;;  %2117 = vmatprep.mubr.msk.f32.mxu1 %vm2517_vm4, %v2518_v12 }
 0xe32   :  { %2231 = vmatprep.subr.bf16.mxu1 %v2516_v8 }
 0xe35   :  { %2233 = vmatpush3.bf16.msra.mxu1 %v2773_v58 }
 0xe36   :  { %2240 = vmatprep.subr.bf16.mxu1 %v2516_v8 }
 0xf03   :  { %v1299_v20 = vpop.f32.mrb[12].mxu1 }
 0xf04   :  { %v1300_v21 = vadd.f32 %v2811_v6, %v1299_v20  ;;  %v2097_v22 = vpop.f32.mrb[13].mxu1 }
 0xf06   :  { %1309 = vrot.lane.b32.xlu1 %v1300_v21, %s2520_s16  ;;  %v1303_v23 = vadd.f32 %v1300_v21, %v2800_v1 }
 0xf08   :  { %v1304_v24 = vmul.f32 0.5, %v1303_v23 }
 0xf0a   :  { %2300 = vtanh.f32 %v1304_v24 }
 0xf14   :  { %v2301_v25 = vpop.eup %2300 }
 0xf15   :  { %v1306_v26 = vadd.f32 1.0, %v2301_v25 }
 0xf17   :  { %v1307_v27 = vmul.f32 0.5, %v1306_v26 }
 0xf19   :  { %v1319_v33 = vsub.f32 1.0, %v1307_v27  ;;  %v1325_v35 = vmul.f32 %v1307_v27, %v1225_v16 }
 0xf78   :  { %v1310_v28 = vpop.permute.xlu1 %1309 }
 0xf79   :  { %v1312_v29 = vmul.f32 %v1310_v28, %v1307_v27 }
 0xf7b   :  { %1314 = vrot.lane.b32.xlu0 %v1312_v29, %s2520_s16 }
 0xfed   :  { %v1315_v30 = vpop.permute.xlu0 %1314 }
 0xfee   :  { %v1317_v31 = vadd.f32 %v1315_v30, %v2800_v1 }
 0xff0   :  { %2302 = vtanh.f32 %v1317_v31 }
 0xffa   :  { %v2303_v32 = vpop.eup %2302 }
 0xffb   :  { %1321 = vrot.lane.b32.xlu1 %v2303_v32, %s2521_s17 }
0x106d   :  { %v1322_v34 = vpop.permute.xlu1 %1321 }
0x106e   :  { %v1324_v36 = vmul.f32 %v1322_v34, %v1319_v33 }
0x1070   :  { %v1326_v37 = vadd.f32 %v1325_v35, %v1324_v36 }
0x1072   :  { %1328 = vrot.lane.b32.xlu0 %v1326_v37, %s2521_s17 }
0x10e4   :  { %v1329_v38 = vpop.permute.xlu0 %1328 }
0x10e5   :  { %1331 = vst.msk [vmem:[#allocation2 + $0x6] sm:$0x3] %vm446_vm9, %v1329_v38  ;;  %2107 = vmatmul.mubr.msk.f32.vlgmr.msra.gmra.mrb[10].mxu0 %vm283_vm7, %v1329_v38 }
0x10e6   :  { %2236 = vmatpush3.bf16.msra.mxu0 %v2761_v52  ;;  %2128 = vmatprep.mubr.msk.f32.mxu0 %vm2517_vm4, %v2518_v12 }
0x10e7   :  { %2237 = vmatprep.subr.bf16.mxu0 %v2516_v8 }
0x10ea   :  { %2239 = vmatpush3.bf16.msra.mxu0 %v2773_v58 }
0x10ec   :  { %v1736_v20 = vld [vmem:[#allocation2] sm:$0xff] }
0x11b8   :  { %v1400_v39 = vpop.f32.mrb[10].mxu0 }
0x11b9   :  { %v1401_v40 = vadd.f32 %v2811_v6, %v1400_v39  ;;  %v2108_v41 = vpop.f32.mrb[11].mxu0 }
0x11bb   :  { %1410 = vrot.lane.b32.xlu1 %v1401_v40, %s2520_s16  ;;  %v1404_v42 = vadd.f32 %v1401_v40, %v2800_v1 }
0x11bd   :  { %v1405_v43 = vmul.f32 0.5, %v1404_v42 }
0x11bf   :  { %2304 = vtanh.f32 %v1405_v43 }
0x11c9   :  { %v2305_v44 = vpop.eup %2304 }
0x11ca   :  { %v1407_v45 = vadd.f32 1.0, %v2305_v44 }
0x11cc   :  { %v1408_v46 = vmul.f32 0.5, %v1407_v45 }
0x11ce   :  { %v1420_v53 = vsub.f32 1.0, %v1408_v46  ;;  %v1426_v55 = vmul.f32 %v1408_v46, %v1326_v37 }
0x122d   :  { %v1411_v47 = vpop.permute.xlu1 %1410 }
0x122e   :  { %v1413_v48 = vmul.f32 %v1411_v47, %v1408_v46 }
0x1230   :  { %1415 = vrot.lane.b32.xlu0 %v1413_v48, %s2520_s16 }
0x12a2   :  { %v1416_v49 = vpop.permute.xlu0 %1415 }
0x12a3   :  { %v1418_v50 = vadd.f32 %v1416_v49, %v2800_v1 }
0x12a5   :  { %2306 = vtanh.f32 %v1418_v50 }
0x12af   :  { %v2307_v51 = vpop.eup %2306 }
0x12b0   :  { %1422 = vrot.lane.b32.xlu1 %v2307_v51, %s2521_s17 }
0x1322   :  { %v1423_v54 = vpop.permute.xlu1 %1422 }
0x1323   :  { %v1425_v56 = vmul.f32 %v1423_v54, %v1420_v53 }
0x1325   :  { %v1427_v57 = vadd.f32 %v1426_v55, %v1425_v56  ;;  %v893_v55 = vrot.slane %v2800_v1, 2 }
0x1327   :  { %1429 = vrot.lane.b32.xlu0 %v1427_v57, %s2521_s17 }
0x1399   :  { %v1430_v59 = vpop.permute.xlu0 %1429 }
0x139a   :  { %1432 = vst.msk [vmem:[#allocation2 + $0x8] sm:$0x3] %vm446_vm9, %v1430_v59  ;;  %2118 = vmatmul.mubr.msk.f32.vlgmr.msra.gmra.mrb[14].mxu1 %vm283_vm7, %v1430_v59 }
0x139b   :  { %2242 = vmatpush3.bf16.msra.mxu1 %v2761_v52  ;;  %2139 = vmatprep.mubr.msk.f32.mxu1 %vm2517_vm4, %v2518_v12 }
0x139c   :  { %2243 = vmatprep.subr.bf16.mxu1 %v2516_v8 }
0x139f   :  { %2245 = vmatpush3.bf16.msra.mxu1 %v2773_v58 }
0x146d   :  { %v1501_v60 = vpop.f32.mrb[14].mxu1 }
0x146e   :  { %v1502_v61 = vadd.f32 %v2811_v6, %v1501_v60  ;;  %v2119_v62 = vpop.f32.mrb[15].mxu1 }
0x1470   :  { %1511 = vrot.lane.b32.xlu1 %v1502_v61, %s2520_s16  ;;  %v1505_v63 = vadd.f32 %v1502_v61, %v2800_v1 }
0x1472   :  { %v1506_v0 = vmul.f32 0.5, %v1505_v63 }
0x1474   :  { %2308 = vtanh.f32 %v1506_v0 }
0x147e   :  { %v2309_v2 = vpop.eup %2308 }
0x147f   :  { %v1508_v5 = vadd.f32 1.0, %v2309_v2 }
0x1481   :  { %v1509_v52 = vmul.f32 0.5, %v1508_v5 }
0x1483   :  { %v1521_v11 = vsub.f32 1.0, %v1509_v52  ;;  %v1527_v14 = vmul.f32 %v1509_v52, %v1427_v57 }
0x14e2   :  { %v1512_v7 = vpop.permute.xlu1 %1511 }
0x14e3   :  { %v1514_v9 = vmul.f32 %v1512_v7, %v1509_v52 }
0x14e5   :  { %1516 = vrot.lane.b32.xlu0 %v1514_v9, %s2520_s16 }
0x1557   :  { %v1517_v8 = vpop.permute.xlu0 %1516 }
0x1558   :  { %v1519_v12 = vadd.f32 %v1517_v8, %v2800_v1 }
0x155a   :  { %2310 = vtanh.f32 %v1519_v12 }
0x1564   :  { %v2311_v58 = vpop.eup %2310 }
0x1565   :  { %1523 = vrot.lane.b32.xlu1 %v2311_v58, %s2521_s17 }
0x15d7   :  { %v1524_v13 = vpop.permute.xlu1 %1523 }
0x15d8   :  { %v1526_v15 = vmul.f32 %v1524_v13, %v1521_v11 }
0x15da   :  { %v1528_v16 = vadd.f32 %v1527_v14, %v1526_v15 }
0x15dc   :  { %1530 = vrot.lane.b32.xlu0 %v1528_v16, %s2521_s17 }
0x164e   :  { %v1531_v19 = vpop.permute.xlu0 %1530 }
0x164f   :  { %1533 = vst.msk [vmem:[#allocation2 + $0xa] sm:$0x3] %vm446_vm9, %v1531_v19  ;;  %2129 = vmatmul.mubr.msk.f32.vlgmr.msra.gmra.mrb[12].mxu0 %vm283_vm7, %v1531_v19 }
0x1650   :  { %2150 = vmatprep.mubr.msk.f32.mxu0 %vm283_vm7, %v1736_v20 }
0x1722   :  { %v1602_v21 = vpop.f32.mrb[12].mxu0 }
0x1723   :  { %v1603_v22 = vadd.f32 %v2811_v6, %v1602_v21  ;;  %v2130_v23 = vpop.f32.mrb[13].mxu0 }
0x1725   :  { %1612 = vrot.lane.b32.xlu1 %v1603_v22, %s2520_s16  ;;  %v1606_v24 = vadd.f32 %v1603_v22, %v2800_v1 }
0x1727   :  { %v1607_v25 = vmul.f32 0.5, %v1606_v24 }
0x1729   :  { %2312 = vtanh.f32 %v1607_v25 }
0x1733   :  { %v2313_v26 = vpop.eup %2312 }
0x1734   :  { %v1609_v27 = vadd.f32 1.0, %v2313_v26 }
0x1736   :  { %v1610_v28 = vmul.f32 0.5, %v1609_v27 }
0x1738   :  { %v1622_v34 = vsub.f32 1.0, %v1610_v28  ;;  %v1628_v36 = vmul.f32 %v1610_v28, %v1528_v16 }
0x1797   :  { %v1613_v29 = vpop.permute.xlu1 %1612 }
0x1798   :  { %v1615_v30 = vmul.f32 %v1613_v29, %v1610_v28 }
0x179a   :  { %1617 = vrot.lane.b32.xlu0 %v1615_v30, %s2520_s16 }
0x180c   :  { %v1618_v31 = vpop.permute.xlu0 %1617 }
0x180d   :  { %v1620_v32 = vadd.f32 %v1618_v31, %v2800_v1  ;;  %v1741_v1 = vld [vmem:[%s2987_s9 + $0x18] sm:$0xff] }
0x180f   :  { %2314 = vtanh.f32 %v1620_v32 }
0x1819   :  { %v2315_v33 = vpop.eup %2314 }
0x181a   :  { %1624 = vrot.lane.b32.xlu1 %v2315_v33, %s2521_s17 }
0x188c   :  { %v1625_v35 = vpop.permute.xlu1 %1624 }
0x188d   :  { %v1627_v37 = vmul.f32 %v1625_v35, %v1622_v34 }
0x188f   :  { %v1629_v38 = vadd.f32 %v1628_v36, %v1627_v37 }
0x1891   :  { %1631 = vrot.lane.b32.xlu0 %v1629_v38, %s2521_s17 }
0x1903   :  { %v1632_v39 = vpop.permute.xlu0 %1631 }
0x1904   :  { %1634 = vst.msk [vmem:[#allocation2 + $0xc] sm:$0x3] %vm446_vm9, %v1632_v39  ;;  %2140 = vmatmul.mubr.msk.f32.vlgmr.msra.gmra.mrb[16].mxu1 %vm283_vm7, %v1632_v39 }
0x19d7   :  { %v1703_v40 = vpop.f32.mrb[16].mxu1 }
0x19d8   :  { %v1704_v41 = vadd.f32 %v2811_v6, %v1703_v40  ;;  %v2141_v42 = vpop.f32.mrb[17].mxu1  ;;  %v899_v6 = vsel %vm898_vm15, %v2824_v18, %v889_v3  ;;  %v1739_v3 = vld [vmem:[%s2987_s9 + $0x8] sm:$0xff] }
0x19d9   :  { %v900_v54 = vsel %vm160_vm0, %v899_v6, %v891_v4  ;;  %v1740_v4 = vld [vmem:[%s2987_s9 + $0x10] sm:$0xff]  ;;  %vm914_vm0 = vcmask 31744  }
0x19da   :  { %1713 = vrot.lane.b32.xlu1 %v1704_v41, %s2520_s16  ;;  %v1707_v43 = vadd.f32 %v1704_v41, %v2816_v10  ;;  %v902_v56 = vsel %vm901_vm1, %v900_v54, %v893_v55  ;;  %v2250_v57 = vpack.c.bf16 %v1741_v1, %v1740_v4 }
0x19dc   :  { %v1708_v44 = vmul.f32 0.5, %v1707_v43 }
0x19de   :  { %2316 = vtanh.f32 %v1708_v44 }
0x19e8   :  { %v2317_v45 = vpop.eup %2316 }
0x19e9   :  { %v1710_v46 = vadd.f32 1.0, %v2317_v45 }
0x19eb   :  { %v1711_v47 = vmul.f32 0.5, %v1710_v46 }
0x19ed   :  { %v1723_v59 = vsub.f32 1.0, %v1711_v47  ;;  %v1729_v61 = vmul.f32 %v1711_v47, %v1629_v38 }
0x1a4c   :  { %v1714_v48 = vpop.permute.xlu1 %1713 }
0x1a4d   :  { %v1716_v49 = vmul.f32 %v1714_v48, %v1711_v47 }
0x1a4f   :  { %1718 = vrot.lane.b32.xlu0 %v1716_v49, %s2520_s16 }
0x1ac1   :  { %v1719_v50 = vpop.permute.xlu0 %1718 }
0x1ac2   :  { %v1721_v51 = vadd.f32 %v1719_v50, %v2816_v10  ;;  %v1738_v10 = vld [vmem:[%s2987_s9] sm:$0xff] }
0x1ac3   :  { %v2246_v18 = vpack.c.bf16 %v1739_v3, %v1738_v10 }
0x1ac4   :  { %2318 = vtanh.f32 %v1721_v51 }
0x1ac5   :  { %2247 = vmatprep.subr.bf16.mxu0 %v2246_v18 }
0x1ac6   :  { %2249 = vmatpush3.bf16.msra.mxu0 %v2246_v18 }
0x1ac7   :  { %2251 = vmatprep.subr.bf16.mxu0 %v2250_v57 }
0x1aca   :  { %2253 = vmatpush3.bf16.msra.mxu0 %v2250_v57 }
0x1ace   :  { %v2319_v53 = vpop.eup %2318 }
0x1acf   :  { %1725 = vrot.lane.b32.xlu1 %v2319_v53, %s2521_s17 }
0x1ad3   :  { %908 = vrot.lane.b32.xlu1 %v902_v56, %s2522_s25 }
0x1b41   :  { %v1726_v60 = vpop.permute.xlu1 %1725 }
0x1b42   :  { %v1728_v62 = vmul.f32 %v1726_v60, %v1723_v59 }
0x1b44   :  { %v1730_v63 = vadd.f32 %v1729_v61, %v1728_v62 }
0x1b45   :  { %v909_v0 = vpop.permute.xlu1 %908 }
0x1b46   :  { %915 = vst.msk [vmem:[%s2991_s13] sm:$0xff] %vm914_vm0, %v909_v0  ;;  %1732 = vrot.lane.b32.xlu0 %v1730_v63, %s2521_s17 }
0x1b4a   :  { %910 = vrot.lane.b32.xlu0 %v2822_v17, %s2522_s25 }
0x1bb8   :  { %v1733_v2 = vpop.permute.xlu0 %1732 }
0x1bb9   :  { %1735 = vst.msk [vmem:[#allocation2 + $0xe] sm:$0x3] %vm446_vm9, %v1733_v2 }
0x1bbc   :  { %v911_v5 = vpop.permute.xlu0 %910 }
0x1bbd   :  { %916 = vst.msk [vmem:[%s2991_s13 + $0x8] sm:$0xff] %vm914_vm0, %v911_v5 }
0x1bc0   :  { %v1737_v52 = vld [vmem:[#allocation2 + $0x8] sm:$0xff] }
0x1bc1   :  { %2151 = vmatmul.mubr.msk.f32.vlgmr.msra.gmra.mrb[14].mxu0 %vm283_vm7, %v1737_v52 }
0x1bc2   :  { %2485 = shalt.err (!%p2482_p4)
}
0x1bc3   :  { %s2486_s19 = scalar_lea.hbm %s2990_s12, 32 }
0x1bc4   :  { %p2487_p5 = scmp.ne.s32.totalorder %s2990_s12, %s2486_s19  ;;  %p2490_p6 = scmp.lt.u32.totalorder %s2486_s19, %s2990_s12 }
0x1bc6   :  { %p2492_p7 = pnand %p2490_p6, %p2487_p5 }
0x1bc8   :  { %2495 = shalt.err (!%p2492_p7)
}
0x1bc9   :  { %1842 = dma.vmem_to_hbm [thread:$0]  %s1840_s18, 32, %s2990_s12, [#allocation5]   ;;  %v1888_v17 = vld [vmem:[%s2988_s10 + $0x7] ss:$0 sm:$0xff] }
0x1c94   :  { %v2152_v7 = vpop.f32.mrb[14].mxu0 }
0x1c95   :  { %v1826_v9 = vadd.f32 %v2152_v7, %v1888_v17  ;;  %v1820_v8 = vpop.f32.mrb[15].mxu0 }
0x1c96   :  { %v1821_v12 = vadd.f32 %v1888_v17, %v1820_v8 }
0x1c97   :  { %1830 = vst.msk [vmem:[%s2989_s11 + $0x8] sm:$0xff] %vm914_vm0, %v1826_v9 }
0x1c98   :  { %1829 = vst.msk [vmem:[%s2989_s11] sm:$0xff] %vm914_vm0, %v1821_v12 }
0x1c99   :  { %2504 = dma.done.wait [#allocation5], 32  }
0x1c9a   :  { %2505 = vsyncadd [#allocation5], 4294967264 }
0x1c9b   :  { %1852 = vsyncpa [#allocation4], 1 }
0x1c9c   :  { %1853 = vsyncpa [#allocation7], 1 }
0x1c9d   :  { %1854 = vsyncpa [#allocation10], 1 }
0x1c9e   :  { %1855 = vsyncpa [#allocation13], 1 }
0x1c9f   :  { %1856 = vsyncpa [#allocation5], 1 }

</bundles_post_ra>
